<compile_context>
chip_gen: v7x
topology: tpu7x:2x2x1
jax: 0.10.0
libtpu: 0.0.40
codegen_flags: <defaults>
</compile_context>

<pallas_src>
from functools import partial

import jax
import jax.numpy as jnp
from jax.experimental import pallas as pl
from jax.experimental.pallas import tpu as pltpu


# ----------------------------- Pallas kernel --------------------------------

def _visual_patch_embed_kernel(patches_ref, w_ref, add_ref, gamma_ref, beta_ref,
                               o_ref, *, eps, matmul_dtype):
    # patches_ref: (br, K)   w_ref: (K, D)   add_ref: (br, D)
    # gamma_ref/beta_ref: (1, D)             o_ref: (br, D)
    x = patches_ref[...]
    w = w_ref[...]
    if matmul_dtype is not None:
        # Optional: feed the MXU bf16 operands (native MXU input on all gens);
        # accumulation stays f32 and the LayerNorm below is f32.
        x = x.astype(matmul_dtype)
        w = w.astype(matmul_dtype)

    # Conv2d-as-matmul patch projection + folded (bias + pos_embed + type_embed).
    y = jnp.dot(x, w, preferred_element_type=jnp.float32) + add_ref[...]

    # LayerNorm over the channel dim (eps = 1e-12, matching nn.LayerNorm).
    mean = jnp.mean(y, axis=-1, keepdims=True)
    centered = y - mean
    var = jnp.mean(centered * centered, axis=-1, keepdims=True)
    yn = centered * jax.lax.rsqrt(var + eps)
    o_ref[...] = (yn * gamma_ref[...] + beta_ref[...]).astype(o_ref.dtype)


# ------------------------------- wrapper -------------------------------------

def _pick_block_rows(n, target=512):
    """Per-batch row block (multiple of 8) and the padded token count."""
    if n <= target:
        br = ((n + 7) // 8) * 8
        return br, br
    br = target                      # 512, multiple of 8, lane-friendly
    n_pad = ((n + br - 1) // br) * br
    return br, n_pad


def _interp_pos_embed(pos_embed, pretrain_grid, Hp, Wp):
    """PatchEmbed._get_pos_embed: reshape to the pretrain grid and bicubic-resize
    to (Hp, Wp).  Identity when the grids already match (the case exercised here)."""
    pre_h, pre_w = pretrain_grid
    D = pos_embed.shape[-1]
    if (pre_h, pre_w) == (Hp, Wp):
        return pos_embed.reshape(Hp * Wp, D)
    grid = pos_embed.reshape(pre_h, pre_w, D)
    grid = jax.image.resize(grid, (Hp, Wp, D), method="bicubic")
    return grid.reshape(Hp * Wp, D)


@partial(jax.jit, static_argnums=(2, 3, 4))
def _visual_patch_embedding_impl(x, params, patch_size, pretrain_grid, matmul_dtype):
    B, C, H, W = x.shape
    p = patch_size
    assert H % p == 0 and W % p == 0, "image size must be divisible by patch size"
    D = params["proj_w"].shape[0]
    Hp, Wp = H // p, W // p
    N = Hp * Wp
    K = C * p * p

    # im2col in Conv2d's (c, kh, kw) flattening order -> (B, N, K).
    # Under jit this is a single fused transpose/copy, not an eager per-call op.
    patches = (x.reshape(B, C, Hp, p, Wp, p)
                .transpose(0, 2, 4, 1, 3, 5)
                .reshape(B, N, K))

    # Conv weight (D, C, p, p) -> (K, D) so the kernel computes patches @ W.
    w = params["proj_w"].reshape(D, K).T

    # Parameter-only precompute: conv bias + positional embedding + type embedding.
    # Passed ONCE as (N, D); the grid's batch axis reuses it (no tiling over B).
    pos = _interp_pos_embed(params["pos_embed"], pretrain_grid, Hp, Wp)   # (N, D)
    add = pos + params["proj_b"][None, :] + params["type_embed"][None, :]  # (N, D)

    gamma = params["gamma"].reshape(1, D)
    beta = params["beta"].reshape(1, D)

    br, n_pad = _pick_block_rows(N, target=512)
    if n_pad != N:
        patches = jnp.pad(patches, ((0, 0), (0, n_pad - N), (0, 0)))
        add = jnp.pad(add, ((0, n_pad - N), (0, 0)))
    nb = n_pad // br
    grid = (B, nb)

    # Scoped-VMEM budget: double-buffered activation blocks + resident weight.
    itemsize = 4
    vmem_est = (2 * br * (K + 2 * D) * itemsize     # patches + add + out blocks
                + 2 * K * D * itemsize              # conv weight
                + 4 * D * itemsize * 4)             # gamma/beta + slack
    vmem_limit = int(min(max(2 * vmem_est, 32 << 20), 56 << 20))

    cost = pl.CostEstimate(
        flops=2 * B * n_pad * K * D,
        transcendentals=B * n_pad,                  # one rsqrt per row
        bytes_accessed=itemsize * (B * n_pad * K + K * D + n_pad * D
                                   + B * n_pad * D),
    )

    kernel = partial(_visual_patch_embed_kernel, eps=1e-12,
                     matmul_dtype=matmul_dtype)

    out = pl.pallas_call(
        kernel,
        out_shape=jax.ShapeDtypeStruct((B, n_pad, D), x.dtype),
        grid_spec=pltpu.PrefetchScalarGridSpec(
            num_scalar_prefetch=0,
            grid=grid,
            in_specs=[
                # patches: squeeze the batch dim, tile the token dim.
                pl.BlockSpec((None, br, K), lambda b, j: (b, j, 0)),
                # conv weight: resident across the whole grid.
                pl.BlockSpec((K, D), lambda b, j: (0, 0)),
                # folded additive term: shared across the batch axis (no tile/copy).
                pl.BlockSpec((br, D), lambda b, j: (j, 0)),
                pl.BlockSpec((1, D), lambda b, j: (0, 0)),   # LN gamma
                pl.BlockSpec((1, D), lambda b, j: (0, 0)),   # LN beta
            ],
            out_specs=pl.BlockSpec((None, br, D), lambda b, j: (b, j, 0)),
        ),
        compiler_params=pltpu.CompilerParams(
            dimension_semantics=("parallel", "parallel"),
            vmem_limit_bytes=vmem_limit),
        cost_estimate=cost,
    )(patches, w, add, gamma, beta)

    if n_pad != N:
        out = out[:, :N, :]
    return out


def visual_patch_embedding(x, params, patch_size=16, matmul_dtype=None):
    """x: (B, C, H, W) float32.  Returns (embeddings (B, N, D), H//16, W//16)."""
    pretrain_grid = tuple(params["pretrain_grid"])
    arrays = {k: v for k, v in params.items() if k != "pretrain_grid"}
    out = _visual_patch_embedding_impl(x, arrays, int(patch_size), pretrain_grid,
                                       matmul_dtype)
    H, W = x.shape[2], x.shape[3]
    # Original module hard-codes //16 for the returned grid size.
    return out, H // 16, W // 16


# ------------------------------ reference ------------------------------------

def visual_patch_embedding_reference(x, params, patch_size=16):
    """Pure-JAX reference reproducing the PyTorch forward (eval mode)."""
    B, C, H, W = x.shape
    D = params["proj_w"].shape[0]

    y = jax.lax.conv_general_dilated(
        x, params["proj_w"],
        window_strides=(patch_size, patch_size),
        padding="VALID",
        dimension_numbers=("NCHW", "OIHW", "NCHW"),
        precision=jax.lax.Precision.HIGHEST)
    y = y + params["proj_b"].reshape(1, D, 1, 1)
    Hp, Wp = y.shape[2], y.shape[3]
    emb = y.reshape(B, D, Hp * Wp).transpose(0, 2, 1)                # (B, N, D)

    pos = _interp_pos_embed(params["pos_embed"], tuple(params["pretrain_grid"]),
                            Hp, Wp)
    emb = emb + pos[None]
    emb = emb + params["type_embed"][None, None, :]

    mean = jnp.mean(emb, axis=-1, keepdims=True)
    var = jnp.mean((emb - mean) ** 2, axis=-1, keepdims=True)
    emb = (emb - mean) / jnp.sqrt(var + 1e-12)
    emb = emb * params["gamma"] + params["beta"]
    return emb, H // 16, W // 16


# --------------------------------- test --------------------------------------

if __name__ == "__main__":
    # Small shapes: batch=2, in_chans=3, image_size=64, patch=16 -> 4x4=16 tokens,
    # embed_dim=768 (module default; lane-dense output).
    B, C_in, image_size, patch_size, D = 2, 3, 64, 16, 768
    H = W = image_size
    Hp = Wp = image_size // patch_size
    N = Hp * Wp

    key = jax.random.PRNGKey(0)
    keys = jax.random.split(key, 8)
    scale = 0.02
    params = {
        "proj_w": scale * jax.random.normal(keys[0], (D, C_in, patch_size, patch_size), jnp.float32),
        "proj_b": scale * jax.random.normal(keys[1], (D,), jnp.float32),
        "pos_embed": scale * jax.random.normal(keys[2], (N, D), jnp.float32),
        "type_embed": scale * jax.random.normal(keys[3], (D,), jnp.float32),
        "gamma": 1.0 + 0.1 * jax.random.normal(keys[4], (D,), jnp.float32),
        "beta": 0.1 * jax.random.normal(keys[5], (D,), jnp.float32),
        "pretrain_grid": (image_size // 16, image_size // 16),
    }
    x = jax.random.normal(keys[6], (B, C_in, H, W), jnp.float32)

    out, h_out, w_out = visual_patch_embedding(x, params, patch_size=patch_size)
    out = jax.block_until_ready(out)

    ref, h_ref, w_ref = visual_patch_embedding_reference(x, params, patch_size=patch_size)
    ref = jax.block_until_ready(ref)

    assert out.shape == (B, N, D), out.shape
    assert (h_out, w_out) == (h_ref, w_ref) == (Hp, Wp)
    max_err = jnp.max(jnp.abs(out - ref))
    assert jnp.allclose(out, ref, atol=2e-4, rtol=2e-4), f"max abs err {max_err}"

    print("KERNEL_OK")
</pallas_src>

<mosaic_0001>
module attributes {stable_mosaic.version = 11 : i64} {
  func.func @_visual_patch_embed_kernel(%arg0: i32, %arg1: i32, %arg2: memref<1x16x768xf32, #tpu.memory_space<vmem>>, %arg3: memref<768x768xf32, #tpu.memory_space<vmem>>, %arg4: memref<16x768xf32, #tpu.memory_space<vmem>>, %arg5: memref<1x768xf32, #tpu.memory_space<vmem>>, %arg6: memref<1x768xf32, #tpu.memory_space<vmem>>, %arg7: memref<1x16x768xf32, #tpu.memory_space<vmem>>) attributes {dimension_semantics = [#tpu.dimension_semantics<parallel>, #tpu.dimension_semantics<parallel>], iteration_bounds = array<i64: 2, 1>, scalar_prefetch = 0 : i64, scratch_operands = 0 : i64, tpu.core_type = #tpu.core_type<tc>, window_params = [{transform_indices = @transform_0, window_bounds = array<i64: 1, 16, 768>}, {pipeline_mode = #tpu.pipeline_mode<synchronous>, transform_indices = @transform_1, window_bounds = array<i64: 768, 768>}, {transform_indices = @transform_2, window_bounds = array<i64: 16, 768>}, {pipeline_mode = #tpu.pipeline_mode<synchronous>, transform_indices = @transform_3, window_bounds = array<i64: 1, 768>}, {pipeline_mode = #tpu.pipeline_mode<synchronous>, transform_indices = @transform_4, window_bounds = array<i64: 1, 768>}, {transform_indices = @transform_5, window_bounds = array<i64: 1, 16, 768>}]} {
    %c0 = arith.constant 0 : index
    %c0_0 = arith.constant 0 : index
    %c0_1 = arith.constant 0 : index
    %0 = vector.load %arg2[%c0, %c0_0, %c0_1] : memref<1x16x768xf32, #tpu.memory_space<vmem>>, vector<1x16x768xf32>
    %1 = vector.shape_cast %0 : vector<1x16x768xf32> to vector<16x768xf32>
    %c0_2 = arith.constant 0 : index
    %c0_3 = arith.constant 0 : index
    %2 = vector.load %arg3[%c0_2, %c0_3] : memref<768x768xf32, #tpu.memory_space<vmem>>, vector<768x768xf32>
    %cst = arith.constant dense<0.000000e+00> : vector<16x768xf32>
    %3 = tpu.matmul %1, %2, %cst {dimension_numbers = #tpu.dot_dimension_numbers<[1], [0], [0], [1], [0, 0, 1, 1], [], []>} : vector<16x768xf32>, vector<768x768xf32>, vector<16x768xf32> -> vector<16x768xf32>
    %c0_4 = arith.constant 0 : index
    %c0_5 = arith.constant 0 : index
    %4 = vector.load %arg4[%c0_4, %c0_5] : memref<16x768xf32, #tpu.memory_space<vmem>>, vector<16x768xf32>
    %5 = arith.addf %3, %4 : vector<16x768xf32>
    %cst_6 = arith.constant dense<0.000000e+00> : vector<16xf32>
    %6 = vector.multi_reduction <add>, %5, %cst_6 [1] : vector<16x768xf32> to vector<16xf32>
    %7 = vector.shape_cast %6 : vector<16xf32> to vector<16x1xf32>
    %cst_7 = arith.constant 7.680000e+02 : f32
    %8 = vector.broadcast %cst_7 : f32 to vector<16x1xf32>
    %9 = arith.divf %7, %8 : vector<16x1xf32>
    %10 = vector.broadcast %9 : vector<16x1xf32> to vector<16x768xf32>
    %11 = arith.subf %5, %10 : vector<16x768xf32>
    %12 = arith.mulf %11, %11 : vector<16x768xf32>
    %cst_8 = arith.constant dense<0.000000e+00> : vector<16xf32>
    %13 = vector.multi_reduction <add>, %12, %cst_8 [1] : vector<16x768xf32> to vector<16xf32>
    %14 = vector.shape_cast %13 : vector<16xf32> to vector<16x1xf32>
    %cst_9 = arith.constant 7.680000e+02 : f32
    %15 = vector.broadcast %cst_9 : f32 to vector<16x1xf32>
    %16 = arith.divf %14, %15 : vector<16x1xf32>
    %cst_10 = arith.constant 9.99999996E-13 : f32
    %17 = vector.broadcast %cst_10 : f32 to vector<16x1xf32>
    %18 = arith.addf %16, %17 : vector<16x1xf32>
    %19 = math.rsqrt %18 : vector<16x1xf32>
    %20 = vector.broadcast %19 : vector<16x1xf32> to vector<16x768xf32>
    %21 = arith.mulf %11, %20 : vector<16x768xf32>
    %c0_11 = arith.constant 0 : index
    %c0_12 = arith.constant 0 : index
    %22 = vector.load %arg5[%c0_11, %c0_12] : memref<1x768xf32, #tpu.memory_space<vmem>>, vector<1x768xf32>
    %23 = vector.broadcast %22 : vector<1x768xf32> to vector<16x768xf32>
    %24 = arith.mulf %21, %23 : vector<16x768xf32>
    %c0_13 = arith.constant 0 : index
    %c0_14 = arith.constant 0 : index
    %25 = vector.load %arg6[%c0_13, %c0_14] : memref<1x768xf32, #tpu.memory_space<vmem>>, vector<1x768xf32>
    %26 = vector.broadcast %25 : vector<1x768xf32> to vector<16x768xf32>
    %27 = arith.addf %24, %26 : vector<16x768xf32>
    %c0_15 = arith.constant 0 : index
    %c0_16 = arith.constant 0 : index
    %c0_17 = arith.constant 0 : index
    %28 = vector.load %arg7[%c0_15, %c0_16, %c0_17] : memref<1x16x768xf32, #tpu.memory_space<vmem>>, vector<1x16x768xf32>
    %29 = vector.shape_cast %28 : vector<1x16x768xf32> to vector<16x768xf32>
    %30 = vector.shape_cast %27 : vector<16x768xf32> to vector<1x16x768xf32>
    tpu.vector_store %arg7[%c0_15, %c0_16, %c0_17], %30 {strides = array<i32>} : memref<1x16x768xf32, #tpu.memory_space<vmem>>, vector<1x16x768xf32>,
    return
  }
  func.func @transform_0(%arg0: i32, %arg1: i32) -> (i32, i32, i32) {
    %c0_i32 = arith.constant 0 : i32
    %c0_i32_0 = arith.constant 0 : i32
    return %arg0, %arg1, %c0_i32 : i32, i32, i32
  }
  func.func @transform_1(%arg0: i32, %arg1: i32) -> (i32, i32) {
    %c0_i32 = arith.constant 0 : i32
    %c0_i32_0 = arith.constant 0 : i32
    %c0_i32_1 = arith.constant 0 : i32
    return %c0_i32, %c0_i32_0 : i32, i32
  }
  func.func @transform_2(%arg0: i32, %arg1: i32) -> (i32, i32) {
    %c0_i32 = arith.constant 0 : i32
    %c0_i32_0 = arith.constant 0 : i32
    return %arg1, %c0_i32 : i32, i32
  }
  func.func @transform_3(%arg0: i32, %arg1: i32) -> (i32, i32) {
    %c0_i32 = arith.constant 0 : i32
    %c0_i32_0 = arith.constant 0 : i32
    %c0_i32_1 = arith.constant 0 : i32
    return %c0_i32, %c0_i32_0 : i32, i32
  }
  func.func @transform_4(%arg0: i32, %arg1: i32) -> (i32, i32) {
    %c0_i32 = arith.constant 0 : i32
    %c0_i32_0 = arith.constant 0 : i32
    %c0_i32_1 = arith.constant 0 : i32
    return %c0_i32, %c0_i32_0 : i32, i32
  }
  func.func @transform_5(%arg0: i32, %arg1: i32) -> (i32, i32, i32) {
    %c0_i32 = arith.constant 0 : i32
    %c0_i32_0 = arith.constant 0 : i32
    return %arg0, %arg1, %c0_i32 : i32, i32, i32
  }
}

</mosaic_0001>

<bundles_post_ra>
// kernel: _visual_patch_embedding_impl.1
= control target key start
LH: loop header
LB: loop body
LE: loop exit
PB: predicated region body
PF: predicated region fallthrough
CT: control target
= control target key end

     0   :  { %10 = vsyncpa [#allocation3], 0  ;;  %s4730_s0 = inlined_call_operand.vmem [shape: f32[2,16,768], index: 0, kind: input, shape index: {}]   ;;  %s4731_s1 = inlined_call_operand.vmem [shape: f32[768,768], index: 1, kind: input, shape index: {}]   ;;  %s4732_s2 = inlined_call_operand.vmem [shape: f32[16,768], index: 2, kind: input, shape index: {}]   ;;  %s4733_s3 = inlined_call_operand.vmem [shape: f32[1,768], index: 3, kind: input, shape index: {}]   ;;  %s4734_s4 = inlined_call_operand.vmem [shape: f32[1,768], index: 4, kind: input, shape index: {}]   ;;  %s4735_s5 = inlined_call_operand.hbm [shape: f32[2,16,768], index: 5, kind: output, shape index: {}]  }
   0x1   :  { %12 = vsyncpa [#allocation3 + $0x1], 0  ;;  %s2702_s18 = smov 0   ;;  %s2704_s19 = smov 0  }
   0x2   :  { %s2706_s20 = smov 0   ;;  %s2708_s21 = smov 0  }
   0x3   :  { %s2710_s22 = smov 0   ;;  %s2712_s23 = smov 0  }
   0x4 LB: > { %s1862_s24 = sadd.s32 4294967295, %s2667_s23   ;;  %s1863_s25 = sadd.s32 4294967294, %s2667_s23   ;;  %s2667_s23 = sphi %s2712_s23, %s18_s23   ;;  %s2663_s22 = sphi %s2710_s22, %s4742_s22   ;;  %s2659_s21 = sphi %s2708_s21, %s4741_s21   ;;  %s2655_s20 = sphi %s2706_s20, %s4740_s20   ;;  %s2651_s19 = sphi %s2704_s19, %s4739_s19   ;;  %s2647_s18 = sphi %s2702_s18, %s4738_s18  }
   0x5   : > { %s30_s26 = sadd.s32 1, %s2663_s22  ;;  %s156_s27 = sadd.s32 1, %s2655_s20 }
   0x6   : > { %p32_p0 = scmp.ge.s32.totalorder %s30_s26, 2  ;;  %p166_p1 = scmp.ne.s32.totalorder %s2655_s20, %s2651_s19 }
   0x7   : > { %p167_p2 = scmp.eq.s32.totalorder %s1862_s24, 1  ;;  %p172_p3 = scmp.ne.s32.totalorder %s2651_s19, %s2647_s18 }
   0x8   : > { %s4744_s26 = smov (%p32_p0, %s30_s26), 0  ;;  %p173_p5 = scmp.eq.s32.totalorder %s1863_s25, 1 }
   0x9   : > { %p2742_p4 = por %p167_p2, %p166_p1  ;;  %s151_s29 = ssub.s32 %s2663_s22, %s4744_s26 }
   0xa   : > { %p1867_p6 = scmp.ge.s32.totalorder %s2667_s23, 1  ;;  %p154_p7 = scmp.eq.s32.totalorder %s151_s29, 0 }
   0xb   : > { %p2749_p8 = por %p173_p5, %p172_p3  ;;  %p224_p9 = scmp.lt.s32.totalorder %s2667_s23, 3 }
   0xc   : > { %s2755_s6 = scalar_select %p154_p7, %s2655_s20, %s156_s27  }
   0xd   : > { %p225_p10 = pnand %p1867_p6, %p224_p9 }
   0xe   : > { %v295_v0 = vld [vmem:[%s4731_s1 + $0x8] sm:$0xff] (!%p225_p10)  ;;  %v301_v1 = vld [vmem:[%s4731_s1 + $0x38] sm:$0xff] (!%p225_p10)  ;;  %v294_v5 = vld [vmem:[%s4731_s1] sm:$0xff] (!%p225_p10)  ;;  %p264_p11 = scmp.lt.s32.totalorder (!%p225_p10), %s2659_s21, 1  ;;  %s260_s10 = sand.u32 (!%p225_p10), 1, %s2651_s19  }
   0xf   : > { %228 = sbr.rel (%p225_p10) target bundleno = 900 (0x384), region = 40  ;;  %v487_v2 = vld [vmem:[%s4731_s1 + $0x608] sm:$0xff] (!%p225_p10)  ;;  %v1872_v3 = vpack.c.bf16 (!%p225_p10), %v301_v1, %v295_v0  ;;  %v493_v4 = vld [vmem:[%s4731_s1 + $0x638] sm:$0xff] (!%p225_p10)  ;;  %v300_v6 = vld [vmem:[%s4731_s1 + $0x30] sm:$0xff] (!%p225_p10)  ;;  %s4684_s24 = scalar_lea.sflag (!%p225_p10), [#allocation3], %s260_s10 }
  0x10   : > { %v1936_v7 = vpack.c.bf16 (!%p225_p10), %v493_v4, %v487_v2  ;;  %v1874_v8 = vpack.c.bf16 (!%p225_p10), %v300_v6, %v294_v5  ;;  %v486_v9 = vld [vmem:[%s4731_s1 + $0x600] sm:$0xff] (!%p225_p10)  ;;  %v492_v10 = vld [vmem:[%s4731_s1 + $0x630] sm:$0xff] (!%p225_p10)  ;;  %v307_v11 = vld [vmem:[%s4731_s1 + $0x68] sm:$0xff] (!%p225_p10)  ;;  %s4660_s11 = smul.u32 (!%p225_p10), 96, %s260_s10  ;;  %s2669_s25 = smov (!%p225_p10), [#allocation2]  }
  0x11   : > { %1873 = vmatprep.subr.bf16.mxu1 (!%p225_p10), %v1872_v3  ;;  %v1938_v12 = vpack.c.bf16 (!%p225_p10), %v492_v10, %v486_v9  ;;  %v313_v13 = vld [vmem:[%s4731_s1 + $0x98] sm:$0xff] (!%p225_p10)  ;;  %v499_v14 = vld [vmem:[%s4731_s1 + $0x668] sm:$0xff] (!%p225_p10)  ;;  %v306_v18 = vld [vmem:[%s4731_s1 + $0x60] sm:$0xff] (!%p225_p10)  ;;  %s2518_s13 = smul.u32 (!%p225_p10), 1536, %s2659_s21  ;;  %s2593_s27 = sshll.u32 (!%p225_p10), %s2669_s25, 4  ;;  %s2594_s27 = int_to_ptr.vmem [resolvable:$false] %s2593_s27 }
  0x12   : > { %v505_v15 = vld [vmem:[%s4731_s1 + $0x698] sm:$0xff] (!%p225_p10)  ;;  %1937 = vmatprep.subr.bf16.mxu0 (!%p225_p10), %v1936_v7  ;;  %1875 = vmatpush1.bf16.msra.mxu1 (!%p225_p10), %v1874_v8  ;;  %v1876_v16 = vpack.c.bf16 (!%p225_p10), %v313_v13, %v307_v11  ;;  %v312_v19 = vld [vmem:[%s4731_s1 + $0x90] sm:$0xff] (!%p225_p10)  ;;  %v498_v20 = vld [vmem:[%s4731_s1 + $0x660] sm:$0xff] (!%p225_p10)  ;;  %s262_s14 = scalar_lea.vmem (!%p225_p10), [#allocation2], %s4660_s11  ;;  %s2595_s29 = scalar_lea.vmem (!%p225_p10), %s2594_s27, 3072 }
  0x13   : > { %v1940_v17 = vpack.c.bf16 (!%p225_p10), %v505_v15, %v499_v14  ;;  %1939 = vmatpush1.bf16.msra.mxu0 (!%p225_p10), %v1938_v12  ;;  %v1878_v21 = vpack.c.bf16 (!%p225_p10), %v312_v19, %v306_v18  ;;  %v504_v22 = vld [vmem:[%s4731_s1 + $0x690] sm:$0xff] (!%p225_p10)  ;;  %v319_v23 = vld [vmem:[%s4731_s1 + $0xc8] sm:$0xff] (!%p225_p10)  ;;  %v325_v24 = vld [vmem:[%s4731_s1 + $0xf8] sm:$0xff] (!%p225_p10)  ;;  %s1765_s15 = sshll.u32 (!%p225_p10), %s262_s14, 4  ;;  %s4680_s15 = int_to_ptr.vmem [resolvable:$true] %s1765_s15 }
  0x14   : > { %1877 = vmatprep.subr.bf16.mxu1 (!%p225_p10), %v1876_v16  ;;  %v1942_v25 = vpack.c.bf16 (!%p225_p10), %v504_v22, %v498_v20  ;;  %v1880_v26 = vpack.c.bf16 (!%p225_p10), %v325_v24, %v319_v23  ;;  %v511_v27 = vld [vmem:[%s4731_s1 + $0x6c8] sm:$0xff] (!%p225_p10)  ;;  %v517_v28 = vld [vmem:[%s4731_s1 + $0x6f8] sm:$0xff] (!%p225_p10)  ;;  %v318_v29 = vld [vmem:[%s4731_s1 + $0xc0] sm:$0xff] (!%p225_p10)  ;;  %p2596_p1 = scmp.lt.s32.totalorder (!%p225_p10), %s4680_s15, %s2594_s27 }
  0x15   : > { %1941 = vmatprep.subr.bf16.mxu0 (!%p225_p10), %v1940_v17  ;;  %v1944_v30 = vpack.c.bf16 (!%p225_p10), %v517_v28, %v511_v27  ;;  %v324_v31 = vld [vmem:[%s4731_s1 + $0xf0] sm:$0xff] (!%p225_p10)  ;;  %v510_v32 = vld [vmem:[%s4731_s1 + $0x6c0] sm:$0xff] (!%p225_p10)  ;;  %v331_v35 = vld [vmem:[%s4731_s1 + $0x128] sm:$0xff] (!%p225_p10) }
  0x16   : > { %v516_v33 = vld [vmem:[%s4731_s1 + $0x6f0] sm:$0xff]  ;;  %1879 = vmatpush1.bf16.msra.mxu1 %v1878_v21  ;;  %v1882_v34 = vpack.c.bf16 %v324_v31, %v318_v29  ;;  %v337_v36 = vld [vmem:[%s4731_s1 + $0x158] sm:$0xff]  ;;  %v523_v37 = vld [vmem:[%s4731_s1 + $0x728] sm:$0xff]  ;;  %s2989_s9 = scalar_select %p264_p11, %s2659_s21, 1 }
  0x17   : > { %1943 = vmatpush1.bf16.msra.mxu0 %v1942_v25  ;;  %1881 = vmatprep.subr.bf16.mxu1 %v1880_v26  ;;  %v1946_v38 = vpack.c.bf16 %v516_v33, %v510_v32  ;;  %v1884_v39 = vpack.c.bf16 %v337_v36, %v331_v35  ;;  %v529_v40 = vld [vmem:[%s4731_s1 + $0x758] sm:$0xff]  ;;  %v330_v41 = vld [vmem:[%s4731_s1 + $0x120] sm:$0xff]  ;;  %v336_v42 = vld [vmem:[%s4731_s1 + $0x150] sm:$0xff] }
  0x18   : > { %1945 = vmatprep.subr.bf16.mxu0 %v1944_v30  ;;  %v1948_v43 = vpack.c.bf16 %v529_v40, %v523_v37  ;;  %v522_v44 = vld [vmem:[%s4731_s1 + $0x720] sm:$0xff]  ;;  %v528_v45 = vld [vmem:[%s4731_s1 + $0x750] sm:$0xff]  ;;  %v343_v46 = vld [vmem:[%s4731_s1 + $0x188] sm:$0xff]  ;;  %v1886_v50 = vpack.c.bf16 %v336_v42, %v330_v41  ;;  %s2517_s12 = smul.u32 96, %s2989_s9  ;;  %s2589_s9 = scalar_lea.vmem %s4680_s15, 1536 }
  0x19   : > { %v349_v47 = vld [vmem:[%s4731_s1 + $0x1b8] sm:$0xff]  ;;  %v535_v48 = vld [vmem:[%s4731_s1 + $0x788] sm:$0xff]  ;;  %v1950_v51 = vpack.c.bf16 %v528_v45, %v522_v44  ;;  %v342_v53 = vld [vmem:[%s4731_s1 + $0x180] sm:$0xff]  ;;  %p2590_p12 = scmp.ne.s32.totalorder %s4680_s15, %s2589_s9  ;;  %p2597_p2 = scmp.lt.s32.totalorder %s2595_s29, %s2589_s9 }
  0x1a   : > { %v541_v49 = vld [vmem:[%s4731_s1 + $0x7b8] sm:$0xff]  ;;  %1883 = vmatpush1.bf16.msra.mxu1 %v1882_v34  ;;  %v1888_v52 = vpack.c.bf16 %v349_v47, %v343_v46  ;;  %v348_v54 = vld [vmem:[%s4731_s1 + $0x1b0] sm:$0xff]  ;;  %v534_v55 = vld [vmem:[%s4731_s1 + $0x780] sm:$0xff]  ;;  %s3043_s17 = scalar_lea.vmem %s4730_s0, %s2517_s12 }
  0x1b   : > { %1947 = vmatpush1.bf16.msra.mxu0 %v1946_v38  ;;  %1885 = vmatprep.subr.bf16.mxu1 %v1884_v39  ;;  %v1952_v56 = vpack.c.bf16 %v541_v49, %v535_v48  ;;  %v540_v57 = vld [vmem:[%s4731_s1 + $0x7b0] sm:$0xff]  ;;  %v355_v58 = vld [vmem:[%s4731_s1 + $0x1e8] sm:$0xff]  ;;  %v361_v59 = vld [vmem:[%s4731_s1 + $0x218] sm:$0xff]  ;;  %v1890_v62 = vpack.c.bf16 %v348_v54, %v342_v53  ;;  %p2591_p13 = pnand %p2590_p12, %p2742_p4  ;;  %p2598_p3 = por %p2597_p2, %p2596_p1 }
  0x1c   : > { %1949 = vmatprep.subr.bf16.mxu0 %v1948_v43  ;;  %v547_v60 = vld [vmem:[%s4731_s1 + $0x7e8] sm:$0xff]  ;;  %v553_v61 = vld [vmem:[%s4731_s1 + $0x818] sm:$0xff]  ;;  %v1954_v63 = vpack.c.bf16 %v540_v57, %v534_v55  ;;  %v1892_v0 = vpack.c.bf16 %v361_v59, %v355_v58  ;;  %v354_v1 = vld [vmem:[%s4731_s1 + $0x1e0] sm:$0xff] }
  0x1d   : > { %v360_v2 = vld [vmem:[%s4731_s1 + $0x210] sm:$0xff]  ;;  %v546_v3 = vld [vmem:[%s4731_s1 + $0x7e0] sm:$0xff]  ;;  %v1956_v4 = vpack.c.bf16 %v553_v61, %v547_v60  ;;  %v367_v6 = vld [vmem:[%s4731_s1 + $0x248] sm:$0xff]  ;;  %p2592_p0 = pneg %p2591_p13 }
  0x1e   : > { %1887 = vmatpush1.bf16.msra.mxu1 %v1886_v50  ;;  %v552_v5 = vld [vmem:[%s4731_s1 + $0x810] sm:$0xff]  ;;  %v373_v7 = vld [vmem:[%s4731_s1 + $0x278] sm:$0xff]  ;;  %v559_v8 = vld [vmem:[%s4731_s1 + $0x848] sm:$0xff]  ;;  %v1894_v10 = vpack.c.bf16 %v360_v2, %v354_v1 }
  0x1f   : > { %1951 = vmatpush1.bf16.msra.mxu0 %v1950_v51  ;;  %1889 = vmatprep.subr.bf16.mxu1 %v1888_v52  ;;  %v565_v9 = vld [vmem:[%s4731_s1 + $0x878] sm:$0xff]  ;;  %v1958_v11 = vpack.c.bf16 %v552_v5, %v546_v3  ;;  %v1896_v12 = vpack.c.bf16 %v373_v7, %v367_v6  ;;  %v366_v13 = vld [vmem:[%s4731_s1 + $0x240] sm:$0xff]  ;;  %v372_v14 = vld [vmem:[%s4731_s1 + $0x270] sm:$0xff]  ;;  %p2599_p5 = pnand %p2598_p3, %p2592_p0 }
  0x20   : > { %1953 = vmatprep.subr.bf16.mxu0 %v1952_v56  ;;  %v558_v15 = vld [vmem:[%s4731_s1 + $0x840] sm:$0xff]  ;;  %v1960_v16 = vpack.c.bf16 %v565_v9, %v559_v8  ;;  %v564_v17 = vld [vmem:[%s4731_s1 + $0x870] sm:$0xff]  ;;  %v379_v18 = vld [vmem:[%s4731_s1 + $0x2a8] sm:$0xff]  ;;  %v1898_v22 = vpack.c.bf16 %v372_v14, %v366_v13 }
  0x21   : > { %v385_v19 = vld [vmem:[%s4731_s1 + $0x2d8] sm:$0xff]  ;;  %v571_v20 = vld [vmem:[%s4731_s1 + $0x8a8] sm:$0xff]  ;;  %v1962_v23 = vpack.c.bf16 %v564_v17, %v558_v15  ;;  %v378_v25 = vld [vmem:[%s4731_s1 + $0x2a0] sm:$0xff] }
  0x22   : > { %1891 = vmatpush1.bf16.msra.mxu1 %v1890_v62  ;;  %v577_v21 = vld [vmem:[%s4731_s1 + $0x8d8] sm:$0xff]  ;;  %v1900_v24 = vpack.c.bf16 %v385_v19, %v379_v18  ;;  %v384_v26 = vld [vmem:[%s4731_s1 + $0x2d0] sm:$0xff]  ;;  %v570_v27 = vld [vmem:[%s4731_s1 + $0x8a0] sm:$0xff] }
  0x23   : > { %1955 = vmatpush1.bf16.msra.mxu0 %v1954_v63  ;;  %1893 = vmatprep.subr.bf16.mxu1 %v1892_v0  ;;  %v1964_v28 = vpack.c.bf16 %v577_v21, %v571_v20  ;;  %v576_v29 = vld [vmem:[%s4731_s1 + $0x8d0] sm:$0xff]  ;;  %v391_v30 = vld [vmem:[%s4731_s1 + $0x308] sm:$0xff]  ;;  %v397_v31 = vld [vmem:[%s4731_s1 + $0x338] sm:$0xff]  ;;  %v1902_v34 = vpack.c.bf16 %v384_v26, %v378_v25 }
  0x24   : > { %1957 = vmatprep.subr.bf16.mxu0 %v1956_v4  ;;  %v583_v32 = vld [vmem:[%s4731_s1 + $0x908] sm:$0xff]  ;;  %v589_v33 = vld [vmem:[%s4731_s1 + $0x938] sm:$0xff]  ;;  %v1966_v35 = vpack.c.bf16 %v576_v29, %v570_v27  ;;  %v1904_v36 = vpack.c.bf16 %v397_v31, %v391_v30  ;;  %v390_v37 = vld [vmem:[%s4731_s1 + $0x300] sm:$0xff] }
  0x25   : > { %v396_v38 = vld [vmem:[%s4731_s1 + $0x330] sm:$0xff]  ;;  %v582_v39 = vld [vmem:[%s4731_s1 + $0x900] sm:$0xff]  ;;  %v1968_v40 = vpack.c.bf16 %v589_v33, %v583_v32  ;;  %v403_v42 = vld [vmem:[%s4731_s1 + $0x368] sm:$0xff] }
  0x26   : > { %1895 = vmatpush1.bf16.msra.mxu1 %v1894_v10  ;;  %v588_v41 = vld [vmem:[%s4731_s1 + $0x930] sm:$0xff]  ;;  %v409_v43 = vld [vmem:[%s4731_s1 + $0x398] sm:$0xff]  ;;  %v595_v44 = vld [vmem:[%s4731_s1 + $0x968] sm:$0xff]  ;;  %v1906_v46 = vpack.c.bf16 %v396_v38, %v390_v37 }
  0x27   : > { %1959 = vmatpush1.bf16.msra.mxu0 %v1958_v11  ;;  %1897 = vmatprep.subr.bf16.mxu1 %v1896_v12  ;;  %v601_v45 = vld [vmem:[%s4731_s1 + $0x998] sm:$0xff]  ;;  %v1970_v47 = vpack.c.bf16 %v588_v41, %v582_v39  ;;  %v1908_v48 = vpack.c.bf16 %v409_v43, %v403_v42  ;;  %v402_v49 = vld [vmem:[%s4731_s1 + $0x360] sm:$0xff]  ;;  %v408_v50 = vld [vmem:[%s4731_s1 + $0x390] sm:$0xff] }
  0x28   : > { %1961 = vmatprep.subr.bf16.mxu0 %v1960_v16  ;;  %v594_v51 = vld [vmem:[%s4731_s1 + $0x960] sm:$0xff]  ;;  %v1972_v52 = vpack.c.bf16 %v601_v45, %v595_v44  ;;  %v600_v53 = vld [vmem:[%s4731_s1 + $0x990] sm:$0xff]  ;;  %v415_v54 = vld [vmem:[%s4731_s1 + $0x3c8] sm:$0xff]  ;;  %v1910_v58 = vpack.c.bf16 %v408_v50, %v402_v49 }
  0x29   : > { %v421_v55 = vld [vmem:[%s4731_s1 + $0x3f8] sm:$0xff]  ;;  %v607_v56 = vld [vmem:[%s4731_s1 + $0x9c8] sm:$0xff]  ;;  %v1974_v59 = vpack.c.bf16 %v600_v53, %v594_v51  ;;  %v414_v61 = vld [vmem:[%s4731_s1 + $0x3c0] sm:$0xff] }
  0x2a   : > { %1899 = vmatpush1.bf16.msra.mxu1 %v1898_v22  ;;  %v613_v57 = vld [vmem:[%s4731_s1 + $0x9f8] sm:$0xff]  ;;  %v1912_v60 = vpack.c.bf16 %v421_v55, %v415_v54  ;;  %v420_v62 = vld [vmem:[%s4731_s1 + $0x3f0] sm:$0xff]  ;;  %v606_v63 = vld [vmem:[%s4731_s1 + $0x9c0] sm:$0xff] }
  0x2b   : > { %1963 = vmatpush1.bf16.msra.mxu0 %v1962_v23  ;;  %1901 = vmatprep.subr.bf16.mxu1 %v1900_v24  ;;  %v1976_v0 = vpack.c.bf16 %v613_v57, %v607_v56  ;;  %v612_v1 = vld [vmem:[%s4731_s1 + $0x9f0] sm:$0xff]  ;;  %v427_v2 = vld [vmem:[%s4731_s1 + $0x428] sm:$0xff]  ;;  %v433_v3 = vld [vmem:[%s4731_s1 + $0x458] sm:$0xff]  ;;  %v1914_v6 = vpack.c.bf16 %v420_v62, %v414_v61 }
  0x2c   : > { %1965 = vmatprep.subr.bf16.mxu0 %v1964_v28  ;;  %v619_v4 = vld [vmem:[%s4731_s1 + $0xa28] sm:$0xff]  ;;  %v625_v5 = vld [vmem:[%s4731_s1 + $0xa58] sm:$0xff]  ;;  %v426_v7 = vld [vmem:[%s4731_s1 + $0x420] sm:$0xff]  ;;  %v1978_v8 = vpack.c.bf16 %v612_v1, %v606_v63  ;;  %v1916_v9 = vpack.c.bf16 %v433_v3, %v427_v2 }
  0x2d   : > { %v432_v10 = vld [vmem:[%s4731_s1 + $0x450] sm:$0xff]  ;;  %v618_v11 = vld [vmem:[%s4731_s1 + $0xa20] sm:$0xff]  ;;  %v1980_v13 = vpack.c.bf16 %v625_v5, %v619_v4  ;;  %v439_v14 = vld [vmem:[%s4731_s1 + $0x488] sm:$0xff] }
  0x2e   : > { %1903 = vmatpush1.bf16.msra.mxu1 %v1902_v34  ;;  %v624_v12 = vld [vmem:[%s4731_s1 + $0xa50] sm:$0xff]  ;;  %v445_v15 = vld [vmem:[%s4731_s1 + $0x4b8] sm:$0xff]  ;;  %v3064_v16 = vld [vmem:[%s3043_s17 + $0x8] sm:$0xff]  ;;  %v1918_v20 = vpack.c.bf16 %v432_v10, %v426_v7 }
  0x2f   : > { %1967 = vmatpush1.bf16.msra.mxu0 %v1966_v35  ;;  %1905 = vmatprep.subr.bf16.mxu1 %v1904_v36  ;;  %v631_v17 = vld [vmem:[%s4731_s1 + $0xa88] sm:$0xff]  ;;  %v637_v18 = vld [vmem:[%s4731_s1 + $0xab8] sm:$0xff]  ;;  %v1982_v21 = vpack.c.bf16 %v624_v12, %v618_v11  ;;  %v1920_v22 = vpack.c.bf16 %v445_v15, %v439_v14  ;;  %v438_v23 = vld [vmem:[%s4731_s1 + $0x480] sm:$0xff] }
  0x30   : > { %1969 = vmatprep.subr.bf16.mxu0 %v1968_v40  ;;  %946 = vmatprep.mubr.f32.mxu1 %v3064_v16  ;;  %v3074_v19 = vld [vmem:[%s3043_s17 + $0x18] sm:$0xff]  ;;  %v444_v24 = vld [vmem:[%s4731_s1 + $0x4b0] sm:$0xff]  ;;  %v630_v25 = vld [vmem:[%s4731_s1 + $0xa80] sm:$0xff]  ;;  %v1984_v26 = vpack.c.bf16 %v637_v18, %v631_v17 }
  0x31   : > { %1023 = vmatprep.mubr.f32.mxu0 %v3074_v19  ;;  %v636_v27 = vld [vmem:[%s4731_s1 + $0xab0] sm:$0xff]  ;;  %v451_v28 = vld [vmem:[%s4731_s1 + $0x4e8] sm:$0xff]  ;;  %v457_v29 = vld [vmem:[%s4731_s1 + $0x518] sm:$0xff]  ;;  %v1922_v32 = vpack.c.bf16 %v444_v24, %v438_v23 }
  0x32   : > { %1907 = vmatpush1.bf16.msra.mxu1 %v1906_v46  ;;  %v643_v30 = vld [vmem:[%s4731_s1 + $0xae8] sm:$0xff]  ;;  %v649_v31 = vld [vmem:[%s4731_s1 + $0xb18] sm:$0xff]  ;;  %v1986_v33 = vpack.c.bf16 %v636_v27, %v630_v25  ;;  %v1924_v34 = vpack.c.bf16 %v457_v29, %v451_v28  ;;  %v450_v35 = vld [vmem:[%s4731_s1 + $0x4e0] sm:$0xff] }
  0x33   : > { %1971 = vmatpush1.bf16.msra.mxu0 %v1970_v47  ;;  %1909 = vmatprep.subr.bf16.mxu1 %v1908_v48  ;;  %v456_v36 = vld [vmem:[%s4731_s1 + $0x510] sm:$0xff]  ;;  %v642_v37 = vld [vmem:[%s4731_s1 + $0xae0] sm:$0xff]  ;;  %v1988_v38 = vpack.c.bf16 %v649_v31, %v643_v30  ;;  %v463_v40 = vld [vmem:[%s4731_s1 + $0x548] sm:$0xff] }
  0x34   : > { %1973 = vmatprep.subr.bf16.mxu0 %v1972_v52  ;;  %v648_v39 = vld [vmem:[%s4731_s1 + $0xb10] sm:$0xff]  ;;  %v469_v41 = vld [vmem:[%s4731_s1 + $0x578] sm:$0xff]  ;;  %v655_v42 = vld [vmem:[%s4731_s1 + $0xb48] sm:$0xff]  ;;  %v1926_v44 = vpack.c.bf16 %v456_v36, %v450_v35 }
  0x35   : > { %v661_v43 = vld [vmem:[%s4731_s1 + $0xb78] sm:$0xff]  ;;  %v1990_v45 = vpack.c.bf16 %v648_v39, %v642_v37  ;;  %v1928_v46 = vpack.c.bf16 %v469_v41, %v463_v40  ;;  %v462_v47 = vld [vmem:[%s4731_s1 + $0x540] sm:$0xff]  ;;  %v468_v48 = vld [vmem:[%s4731_s1 + $0x570] sm:$0xff] }
  0x36   : > { %1911 = vmatpush1.bf16.msra.mxu1 %v1910_v58  ;;  %v654_v49 = vld [vmem:[%s4731_s1 + $0xb40] sm:$0xff]  ;;  %v1992_v50 = vpack.c.bf16 %v661_v43, %v655_v42  ;;  %v660_v51 = vld [vmem:[%s4731_s1 + $0xb70] sm:$0xff]  ;;  %v475_v52 = vld [vmem:[%s4731_s1 + $0x5a8] sm:$0xff]  ;;  %v1930_v56 = vpack.c.bf16 %v468_v48, %v462_v47 }
  0x37   : > { %1975 = vmatpush1.bf16.msra.mxu0 %v1974_v59  ;;  %1913 = vmatprep.subr.bf16.mxu1 %v1912_v60  ;;  %v481_v53 = vld [vmem:[%s4731_s1 + $0x5d8] sm:$0xff]  ;;  %v667_v54 = vld [vmem:[%s4731_s1 + $0xba8] sm:$0xff]  ;;  %v1994_v57 = vpack.c.bf16 %v660_v51, %v654_v49  ;;  %v474_v59 = vld [vmem:[%s4731_s1 + $0x5a0] sm:$0xff] }
  0x38   : > { %1977 = vmatprep.subr.bf16.mxu0 %v1976_v0  ;;  %v673_v55 = vld [vmem:[%s4731_s1 + $0xbd8] sm:$0xff]  ;;  %v1932_v58 = vpack.c.bf16 %v481_v53, %v475_v52  ;;  %v480_v60 = vld [vmem:[%s4731_s1 + $0x5d0] sm:$0xff]  ;;  %v666_v61 = vld [vmem:[%s4731_s1 + $0xba0] sm:$0xff] }
  0x39   : > { %v1996_v62 = vpack.c.bf16 %v673_v55, %v667_v54  ;;  %v672_v63 = vld [vmem:[%s4731_s1 + $0xbd0] sm:$0xff]  ;;  %v297_v0 = vld [vmem:[%s4731_s1 + $0x18] sm:$0xff]  ;;  %v303_v1 = vld [vmem:[%s4731_s1 + $0x48] sm:$0xff]  ;;  %v1934_v4 = vpack.c.bf16 %v480_v60, %v474_v59 }
  0x3a   : > { %1915 = vmatpush1.bf16.msra.mxu1 %v1914_v6  ;;  %v679_v2 = vld [vmem:[%s4731_s1 + $0xc08] sm:$0xff]  ;;  %v685_v3 = vld [vmem:[%s4731_s1 + $0xc38] sm:$0xff]  ;;  %v1998_v5 = vpack.c.bf16 %v672_v63, %v666_v61  ;;  %v2064_v6 = vpack.c.bf16 %v303_v1, %v297_v0  ;;  %v678_v7 = vld [vmem:[%s4731_s1 + $0xc00] sm:$0xff] }
  0x3b   : > { %1979 = vmatpush1.bf16.msra.mxu0 %v1978_v8  ;;  %1917 = vmatprep.subr.bf16.mxu1 %v1916_v9  ;;  %v296_v8 = vld [vmem:[%s4731_s1 + $0x10] sm:$0xff]  ;;  %v302_v9 = vld [vmem:[%s4731_s1 + $0x40] sm:$0xff]  ;;  %v2000_v10 = vpack.c.bf16 %v685_v3, %v679_v2  ;;  %v309_v12 = vld [vmem:[%s4731_s1 + $0x78] sm:$0xff] }
  0x3c   : > { %1981 = vmatprep.subr.bf16.mxu0 %v1980_v13  ;;  %v684_v11 = vld [vmem:[%s4731_s1 + $0xc30] sm:$0xff]  ;;  %v315_v13 = vld [vmem:[%s4731_s1 + $0xa8] sm:$0xff]  ;;  %v697_v15 = vld [vmem:[%s4731_s1 + $0xc98] sm:$0xff] }
  0x3d   : > { %v691_v14 = vld [vmem:[%s4731_s1 + $0xc68] sm:$0xff]  ;;  %v3198_v17 = vld [vmem:[%s3043_s17] sm:$0xff]  ;;  %v284_v18 = vld [vmem:[%s3043_s17 + $0x10] sm:$0xff] }
  0x3e   : > { %1919 = vmatpush1.bf16.msra.mxu1 %v1918_v20  ;;  %v2066_v20 = vpack.c.bf16 %v302_v9, %v296_v8  ;;  %v690_v23 = vld [vmem:[%s4731_s1 + $0xc60] sm:$0xff]  ;;  %v308_v24 = vld [vmem:[%s4731_s1 + $0x70] sm:$0xff]  ;;  %v321_v28 = vld [vmem:[%s4731_s1 + $0xd8] sm:$0xff] }
  0x3f   : > { %1983 = vmatpush1.bf16.msra.mxu0 %v1982_v21  ;;  %1921 = vmatprep.subr.bf16.mxu1 %v1920_v22  ;;  %v2002_v21 = vpack.c.bf16 %v684_v11, %v678_v7  ;;  %v2068_v22 = vpack.c.bf16 %v315_v13, %v309_v12  ;;  %v314_v25 = vld [vmem:[%s4731_s1 + $0xa0] sm:$0xff]  ;;  %v696_v27 = vld [vmem:[%s4731_s1 + $0xc90] sm:$0xff]  ;;  %v327_v29 = vld [vmem:[%s4731_s1 + $0x108] sm:$0xff] }
  0x40   : > { %1985 = vmatprep.subr.bf16.mxu0 %v1984_v26  ;;  %v2004_v26 = vpack.c.bf16 %v697_v15, %v691_v14  ;;  %v703_v30 = vld [vmem:[%s4731_s1 + $0xcc8] sm:$0xff]  ;;  %v709_v31 = vld [vmem:[%s4731_s1 + $0xcf8] sm:$0xff]  ;;  %v702_v35 = vld [vmem:[%s4731_s1 + $0xcc0] sm:$0xff] }
  0x41   : > { %v320_v36 = vld [vmem:[%s4731_s1 + $0xd0] sm:$0xff]  ;;  %v326_v37 = vld [vmem:[%s4731_s1 + $0x100] sm:$0xff]  ;;  %v333_v40 = vld [vmem:[%s4731_s1 + $0x138] sm:$0xff] }
  0x42   : > { %1923 = vmatpush1.bf16.msra.mxu1 %v1922_v32  ;;  %v2070_v32 = vpack.c.bf16 %v314_v25, %v308_v24  ;;  %v708_v39 = vld [vmem:[%s4731_s1 + $0xcf0] sm:$0xff]  ;;  %v339_v41 = vld [vmem:[%s4731_s1 + $0x168] sm:$0xff]  ;;  %v721_v43 = vld [vmem:[%s4731_s1 + $0xd58] sm:$0xff] }
  0x43   : > { %1987 = vmatpush1.bf16.msra.mxu0 %v1986_v33  ;;  %1925 = vmatprep.subr.bf16.mxu1 %v1924_v34  ;;  %v2006_v33 = vpack.c.bf16 %v696_v27, %v690_v23  ;;  %v2072_v34 = vpack.c.bf16 %v327_v29, %v321_v28  ;;  %v715_v42 = vld [vmem:[%s4731_s1 + $0xd28] sm:$0xff]  ;;  %v714_v47 = vld [vmem:[%s4731_s1 + $0xd20] sm:$0xff]  ;;  %v332_v48 = vld [vmem:[%s4731_s1 + $0x130] sm:$0xff] }
  0x44   : > { %1989 = vmatprep.subr.bf16.mxu0 %v1988_v38  ;;  %v2008_v38 = vpack.c.bf16 %v709_v31, %v703_v30  ;;  %v338_v49 = vld [vmem:[%s4731_s1 + $0x160] sm:$0xff]  ;;  %v720_v51 = vld [vmem:[%s4731_s1 + $0xd50] sm:$0xff]  ;;  %v345_v52 = vld [vmem:[%s4731_s1 + $0x198] sm:$0xff] }
  0x45   : > { %v351_v53 = vld [vmem:[%s4731_s1 + $0x1c8] sm:$0xff]  ;;  %v733_v55 = vld [vmem:[%s4731_s1 + $0xdb8] sm:$0xff]  ;;  %v726_v59 = vld [vmem:[%s4731_s1 + $0xd80] sm:$0xff] }
  0x46   : > { %1927 = vmatpush1.bf16.msra.mxu1 %v1926_v44  ;;  %v2074_v44 = vpack.c.bf16 %v326_v37, %v320_v36  ;;  %v727_v54 = vld [vmem:[%s4731_s1 + $0xd88] sm:$0xff]  ;;  %v344_v60 = vld [vmem:[%s4731_s1 + $0x190] sm:$0xff]  ;;  %v350_v61 = vld [vmem:[%s4731_s1 + $0x1c0] sm:$0xff] }
  0x47   : > { %1991 = vmatpush1.bf16.msra.mxu0 %v1990_v45  ;;  %1929 = vmatprep.subr.bf16.mxu1 %v1928_v46  ;;  %v2010_v45 = vpack.c.bf16 %v708_v39, %v702_v35  ;;  %v2076_v46 = vpack.c.bf16 %v339_v41, %v333_v40  ;;  %v732_v63 = vld [vmem:[%s4731_s1 + $0xdb0] sm:$0xff]  ;;  %v357_v0 = vld [vmem:[%s4731_s1 + $0x1f8] sm:$0xff]  ;;  %v363_v1 = vld [vmem:[%s4731_s1 + $0x228] sm:$0xff] }
  0x48   : > { %1993 = vmatprep.subr.bf16.mxu0 %v1992_v50  ;;  %v2012_v50 = vpack.c.bf16 %v721_v43, %v715_v42  ;;  %v739_v2 = vld [vmem:[%s4731_s1 + $0xde8] sm:$0xff]  ;;  %v745_v3 = vld [vmem:[%s4731_s1 + $0xe18] sm:$0xff]  ;;  %v738_v7 = vld [vmem:[%s4731_s1 + $0xde0] sm:$0xff] }
  0x49   : > { %v356_v8 = vld [vmem:[%s4731_s1 + $0x1f0] sm:$0xff]  ;;  %v362_v9 = vld [vmem:[%s4731_s1 + $0x220] sm:$0xff]  ;;  %v369_v12 = vld [vmem:[%s4731_s1 + $0x258] sm:$0xff] }
  0x4a   : > { %1931 = vmatpush1.bf16.msra.mxu1 %v1930_v56  ;;  %v2078_v56 = vpack.c.bf16 %v338_v49, %v332_v48  ;;  %v744_v11 = vld [vmem:[%s4731_s1 + $0xe10] sm:$0xff]  ;;  %v375_v13 = vld [vmem:[%s4731_s1 + $0x288] sm:$0xff]  ;;  %v757_v15 = vld [vmem:[%s4731_s1 + $0xe78] sm:$0xff] }
  0x4b   : > { %1995 = vmatpush1.bf16.msra.mxu0 %v1994_v57  ;;  %1933 = vmatprep.subr.bf16.mxu1 %v1932_v58  ;;  %v2014_v57 = vpack.c.bf16 %v720_v51, %v714_v47  ;;  %v2080_v58 = vpack.c.bf16 %v351_v53, %v345_v52  ;;  %v751_v14 = vld [vmem:[%s4731_s1 + $0xe48] sm:$0xff]  ;;  %v2022_v23 = vpack.c.bf16 %v744_v11, %v738_v7  ;;  %v750_v25 = vld [vmem:[%s4731_s1 + $0xe40] sm:$0xff]  ;;  %v756_v29 = vld [vmem:[%s4731_s1 + $0xe70] sm:$0xff] }
  0x4c   : > { %1997 = vmatprep.subr.bf16.mxu0 %v1996_v62  ;;  %v2016_v62 = vpack.c.bf16 %v733_v55, %v727_v54  ;;  %v2088_v24 = vpack.c.bf16 %v375_v13, %v369_v12  ;;  %v374_v27 = vld [vmem:[%s4731_s1 + $0x280] sm:$0xff]  ;;  %v2024_v28 = vpack.c.bf16 %v757_v15, %v751_v14  ;;  %v381_v30 = vld [vmem:[%s4731_s1 + $0x2b8] sm:$0xff]  ;;  %v387_v31 = vld [vmem:[%s4731_s1 + $0x2e8] sm:$0xff]  ;;  %v2026_v37 = vpack.c.bf16 %v756_v29, %v750_v25 }
  0x4d   : > { %v3362_v36 = vld [vmem:[%s3043_s17 + $0x28] sm:$0xff]  ;;  %v762_v39 = vld [vmem:[%s4731_s1 + $0xea0] sm:$0xff]  ;;  %v380_v40 = vld [vmem:[%s4731_s1 + $0x2b0] sm:$0xff] }
  0x4e   : > { %1935 = vmatpush1.bf16.msra.mxu1 %v1934_v4  ;;  %v2082_v4 = vpack.c.bf16 %v350_v61, %v344_v60  ;;  %v386_v41 = vld [vmem:[%s4731_s1 + $0x2e0] sm:$0xff]  ;;  %v768_v43 = vld [vmem:[%s4731_s1 + $0xed0] sm:$0xff]  ;;  %v781_v47 = vld [vmem:[%s4731_s1 + $0xf38] sm:$0xff] }
  0x4f   : > { %1999 = vmatpush1.bf16.msra.mxu0 %v1998_v5  ;;  %2065 = vmatprep.subr.bf16.mxu1 %v2064_v6  ;;  %v2018_v5 = vpack.c.bf16 %v732_v63, %v726_v59  ;;  %v2084_v6 = vpack.c.bf16 %v363_v1, %v357_v0  ;;  %v2094_v48 = vpack.c.bf16 %v386_v41, %v380_v40  ;;  %v774_v51 = vld [vmem:[%s4731_s1 + $0xf00] sm:$0xff]  ;;  %v392_v52 = vld [vmem:[%s4731_s1 + $0x310] sm:$0xff]  ;;  %v793_v59 = vld [vmem:[%s4731_s1 + $0xf98] sm:$0xff] }
  0x50   : > { %2001 = vmatprep.subr.bf16.mxu0 %v2000_v10  ;;  %v2020_v10 = vpack.c.bf16 %v745_v3, %v739_v2  ;;  %v2030_v49 = vpack.c.bf16 %v768_v43, %v762_v39  ;;  %v398_v53 = vld [vmem:[%s4731_s1 + $0x340] sm:$0xff]  ;;  %v780_v55 = vld [vmem:[%s4731_s1 + $0xf30] sm:$0xff]  ;;  %v805_v7 = vld [vmem:[%s4731_s1 + $0xff8] sm:$0xff] }
  0x51   : > { %947 = vmatmul.mubr.f32.vlgmr.msra.gmra.mrb[0].mxu1 %v3198_v17  ;;  %v2098_v60 = vpack.c.bf16 %v398_v53, %v392_v52  ;;  %v2034_v61 = vpack.c.bf16 %v780_v55, %v774_v51  ;;  %v786_v63 = vld [vmem:[%s4731_s1 + $0xf60] sm:$0xff]  ;;  %v404_v0 = vld [vmem:[%s4731_s1 + $0x370] sm:$0xff]  ;;  %v817_v25 = vld [vmem:[%s4731_s1 + $0x1058] sm:$0xff] }
  0x52   : > { %1024 = vmatmul.mubr.f32.vlgmr.msra.gmra.mrb[0].mxu0 %v284_v18  ;;  %2067 = vmatpush1.bf16.msra.mxu1 %v2066_v20  ;;  %v2086_v18 = vpack.c.bf16 %v362_v9, %v356_v8  ;;  %v3323_v20 = vld [vmem:[%s3043_s17 + $0x48] sm:$0xff]  ;;  %v410_v1 = vld [vmem:[%s4731_s1 + $0x3a0] sm:$0xff]  ;;  %v792_v3 = vld [vmem:[%s4731_s1 + $0xf90] sm:$0xff] }
  0x53   : > { %2003 = vmatpush1.bf16.msra.mxu0 %v2002_v21  ;;  %2069 = vmatprep.subr.bf16.mxu1 %v2068_v22  ;;  %v3326_v21 = vld [vmem:[%s3043_s17 + $0x38] sm:$0xff]  ;;  %v3329_v22 = vld [vmem:[%s3043_s17 + $0x40] sm:$0xff]  ;;  %v2102_v8 = vpack.c.bf16 %v410_v1, %v404_v0  ;;  %v2038_v9 = vpack.c.bf16 %v792_v3, %v786_v63  ;;  %v416_v12 = vld [vmem:[%s4731_s1 + $0x3d0] sm:$0xff] }
  0x54   : > { %2005 = vmatprep.subr.bf16.mxu0 %v2004_v26  ;;  %v368_v26 = vld [vmem:[%s4731_s1 + $0x250] sm:$0xff]  ;;  %1029 = vmatprep.mubr.f32.mxu0 %v3323_v20  ;;  %v798_v11 = vld [vmem:[%s4731_s1 + $0xfc0] sm:$0xff]  ;;  %v829_v39 = vld [vmem:[%s4731_s1 + $0x10b8] sm:$0xff] }
  0x55   : > { %952 = vmatprep.mubr.f32.mxu1 %v3326_v21  ;;  %v2090_v35 = vpack.c.bf16 %v374_v27, %v368_v26  ;;  %v422_v13 = vld [vmem:[%s4731_s1 + $0x400] sm:$0xff]  ;;  %v804_v15 = vld [vmem:[%s4731_s1 + $0xff0] sm:$0xff]  ;;  %v841_v51 = vld [vmem:[%s4731_s1 + $0x1118] sm:$0xff] }
  0x56   : > { %2071 = vmatpush1.bf16.msra.mxu1 %v2070_v32  ;;  %v763_v32 = vld [vmem:[%s4731_s1 + $0xea8] sm:$0xff]  ;;  %1030 = vmatmul.mubr.f32.gmra.mrb[2].mxu0 %v3329_v22  ;;  %v2106_v26 = vpack.c.bf16 %v422_v13, %v416_v12  ;;  %v2042_v27 = vpack.c.bf16 %v804_v15, %v798_v11  ;;  %v810_v29 = vld [vmem:[%s4731_s1 + $0x1020] sm:$0xff]  ;;  %v853_v63 = vld [vmem:[%s4731_s1 + $0x1178] sm:$0xff] }
  0x57   : > { %2007 = vmatpush1.bf16.msra.mxu0 %v2006_v33  ;;  %2073 = vmatprep.subr.bf16.mxu1 %v2072_v34  ;;  %v769_v33 = vld [vmem:[%s4731_s1 + $0xed8] sm:$0xff]  ;;  %v3359_v34 = vld [vmem:[%s3043_s17 + $0x30] sm:$0xff]  ;;  %v822_v43 = vld [vmem:[%s4731_s1 + $0x1080] sm:$0xff] }
  0x58   : > { %2009 = vmatprep.subr.bf16.mxu0 %v2008_v38  ;;  %v2092_v38 = vpack.c.bf16 %v387_v31, %v381_v30  ;;  %v2028_v42 = vpack.c.bf16 %v769_v33, %v763_v32  ;;  %953 = vmatmul.mubr.f32.gmra.mrb[2].mxu1 %v3359_v34  ;;  %v428_v30 = vld [vmem:[%s4731_s1 + $0x430] sm:$0xff]  ;;  %v434_v31 = vld [vmem:[%s4731_s1 + $0x460] sm:$0xff]  ;;  %v865_v11 = vld [vmem:[%s4731_s1 + $0x11d8] sm:$0xff] }
  0x59   : > { %1100 = vmatprep.mubr.f32.mxu0 %v3362_v36  ;;  %1177 = vmatprep.mubr.f32.mxu1 %v3064_v16  ;;  %v816_v33 = vld [vmem:[%s4731_s1 + $0x1050] sm:$0xff]  ;;  %v2110_v40 = vpack.c.bf16 %v434_v31, %v428_v30  ;;  %v834_v55 = vld [vmem:[%s4731_s1 + $0x10e0] sm:$0xff] }
  0x5a   : > { %2075 = vmatpush1.bf16.msra.mxu1 %v2074_v44  ;;  %v393_v44 = vld [vmem:[%s4731_s1 + $0x318] sm:$0xff]  ;;  %v2046_v41 = vpack.c.bf16 %v816_v33, %v810_v29  ;;  %v846_v3 = vld [vmem:[%s4731_s1 + $0x1140] sm:$0xff]  ;;  %v488_v33 = vld [vmem:[%s4731_s1 + $0x610] sm:$0xff] }
  0x5b   : > { %2011 = vmatpush1.bf16.msra.mxu0 %v2010_v45  ;;  %2077 = vmatprep.subr.bf16.mxu1 %v2076_v46  ;;  %v399_v45 = vld [vmem:[%s4731_s1 + $0x348] sm:$0xff]  ;;  %v858_v15 = vld [vmem:[%s4731_s1 + $0x11a0] sm:$0xff]  ;;  %v305_v29 = vld [vmem:[%s4731_s1 + $0x58] sm:$0xff] }
  0x5c   : > { %2013 = vmatprep.subr.bf16.mxu0 %v2012_v50  ;;  %v775_v46 = vld [vmem:[%s4731_s1 + $0xf08] sm:$0xff]  ;;  %v2096_v50 = vpack.c.bf16 %v399_v45, %v393_v44  ;;  %v440_v44 = vld [vmem:[%s4731_s1 + $0x490] sm:$0xff]  ;;  %v446_v45 = vld [vmem:[%s4731_s1 + $0x4c0] sm:$0xff] }
  0x5d   : > { %v2032_v54 = vpack.c.bf16 %v781_v47, %v775_v46  ;;  %v828_v47 = vld [vmem:[%s4731_s1 + $0x10b0] sm:$0xff]  ;;  %v2114_v52 = vpack.c.bf16 %v446_v45, %v440_v44  ;;  %v286_v44 = vld [vmem:[%s3043_s17 + $0x20] sm:$0xff] }
  0x5e   : > { %2079 = vmatpush1.bf16.msra.mxu1 %v2078_v56  ;;  %v405_v56 = vld [vmem:[%s4731_s1 + $0x378] sm:$0xff]  ;;  %v2050_v53 = vpack.c.bf16 %v828_v47, %v822_v43 }
  0x5f   : > { %2015 = vmatpush1.bf16.msra.mxu0 %v2014_v57  ;;  %2081 = vmatprep.subr.bf16.mxu1 %v2080_v58  ;;  %v411_v57 = vld [vmem:[%s4731_s1 + $0x3a8] sm:$0xff]  ;;  %v317_v43 = vld [vmem:[%s4731_s1 + $0xb8] sm:$0xff] }
  0x60   : > { %2017 = vmatprep.subr.bf16.mxu0 %v2016_v62  ;;  %v787_v58 = vld [vmem:[%s4731_s1 + $0xf68] sm:$0xff]  ;;  %v2100_v62 = vpack.c.bf16 %v411_v57, %v405_v56  ;;  %v452_v56 = vld [vmem:[%s4731_s1 + $0x4f0] sm:$0xff]  ;;  %v458_v57 = vld [vmem:[%s4731_s1 + $0x520] sm:$0xff] }
  0x61   : > { %v2036_v2 = vpack.c.bf16 %v793_v59, %v787_v58  ;;  %v840_v59 = vld [vmem:[%s4731_s1 + $0x1110] sm:$0xff]  ;;  %v2118_v0 = vpack.c.bf16 %v458_v57, %v452_v56  ;;  %v323_v56 = vld [vmem:[%s4731_s1 + $0xe8] sm:$0xff]  ;;  %v329_v57 = vld [vmem:[%s4731_s1 + $0x118] sm:$0xff] }
  0x62   : > { %2083 = vmatpush1.bf16.msra.mxu1 %v2082_v4  ;;  %v417_v4 = vld [vmem:[%s4731_s1 + $0x3d8] sm:$0xff]  ;;  %v2054_v1 = vpack.c.bf16 %v840_v59, %v834_v55  ;;  %v519_v55 = vld [vmem:[%s4731_s1 + $0x708] sm:$0xff] }
  0x63   : > { %2019 = vmatpush1.bf16.msra.mxu0 %v2018_v5  ;;  %2085 = vmatprep.subr.bf16.mxu1 %v2084_v6  ;;  %v423_v5 = vld [vmem:[%s4731_s1 + $0x408] sm:$0xff] }
  0x64   : > { %2021 = vmatprep.subr.bf16.mxu0 %v2020_v10  ;;  %v799_v6 = vld [vmem:[%s4731_s1 + $0xfc8] sm:$0xff]  ;;  %v2104_v10 = vpack.c.bf16 %v423_v5, %v417_v4  ;;  %v464_v4 = vld [vmem:[%s4731_s1 + $0x550] sm:$0xff]  ;;  %v470_v5 = vld [vmem:[%s4731_s1 + $0x580] sm:$0xff] }
  0x65   : > { %v2040_v14 = vpack.c.bf16 %v805_v7, %v799_v6  ;;  %v852_v7 = vld [vmem:[%s4731_s1 + $0x1170] sm:$0xff]  ;;  %v2122_v12 = vpack.c.bf16 %v470_v5, %v464_v4  ;;  %v335_v4 = vld [vmem:[%s4731_s1 + $0x148] sm:$0xff]  ;;  %v341_v5 = vld [vmem:[%s4731_s1 + $0x178] sm:$0xff] }
  0x66   : > { %2087 = vmatpush1.bf16.msra.mxu1 %v2086_v18  ;;  %v429_v18 = vld [vmem:[%s4731_s1 + $0x438] sm:$0xff]  ;;  %v2058_v13 = vpack.c.bf16 %v852_v7, %v846_v3  ;;  %v531_v3 = vld [vmem:[%s4731_s1 + $0x768] sm:$0xff] }
  0x67   : > { %2023 = vmatpush1.bf16.msra.mxu0 %v2022_v23  ;;  %2089 = vmatprep.subr.bf16.mxu1 %v2088_v24  ;;  %v435_v23 = vld [vmem:[%s4731_s1 + $0x468] sm:$0xff] }
  0x68   : > { %2025 = vmatprep.subr.bf16.mxu0 %v2024_v28  ;;  %v811_v24 = vld [vmem:[%s4731_s1 + $0x1028] sm:$0xff]  ;;  %v2108_v28 = vpack.c.bf16 %v435_v23, %v429_v18  ;;  %v476_v18 = vld [vmem:[%s4731_s1 + $0x5b0] sm:$0xff]  ;;  %v482_v23 = vld [vmem:[%s4731_s1 + $0x5e0] sm:$0xff] }
  0x69   : > { %v2044_v32 = vpack.c.bf16 %v817_v25, %v811_v24  ;;  %v864_v25 = vld [vmem:[%s4731_s1 + $0x11d0] sm:$0xff]  ;;  %v2126_v30 = vpack.c.bf16 %v482_v23, %v476_v18  ;;  %v347_v18 = vld [vmem:[%s4731_s1 + $0x1a8] sm:$0xff]  ;;  %v353_v23 = vld [vmem:[%s4731_s1 + $0x1d8] sm:$0xff] }
  0x6a   : > { %2091 = vmatpush1.bf16.msra.mxu1 %v2090_v35  ;;  %v441_v35 = vld [vmem:[%s4731_s1 + $0x498] sm:$0xff]  ;;  %v2062_v31 = vpack.c.bf16 %v864_v25, %v858_v15  ;;  %v543_v15 = vld [vmem:[%s4731_s1 + $0x7c8] sm:$0xff] }
  0x6b   : > { %2027 = vmatpush1.bf16.msra.mxu0 %v2026_v37  ;;  %2093 = vmatprep.subr.bf16.mxu1 %v2092_v38  ;;  %v447_v37 = vld [vmem:[%s4731_s1 + $0x4c8] sm:$0xff] }
  0x6c   : > { %2029 = vmatprep.subr.bf16.mxu0 %v2028_v42  ;;  %v823_v38 = vld [vmem:[%s4731_s1 + $0x1088] sm:$0xff]  ;;  %v2112_v42 = vpack.c.bf16 %v447_v37, %v441_v35  ;;  %v494_v35 = vld [vmem:[%s4731_s1 + $0x640] sm:$0xff] }
  0x6d   : > { %v2048_v46 = vpack.c.bf16 %v829_v39, %v823_v38  ;;  %v298_v38 = vld [vmem:[%s4731_s1 + $0x20] sm:$0xff]  ;;  %v304_v39 = vld [vmem:[%s4731_s1 + $0x50] sm:$0xff]  ;;  %v2130_v45 = vpack.c.bf16 %v494_v35, %v488_v33  ;;  %v365_v33 = vld [vmem:[%s4731_s1 + $0x238] sm:$0xff] }
  0x6e   : > { %2095 = vmatpush1.bf16.msra.mxu1 %v2094_v48  ;;  %v453_v48 = vld [vmem:[%s4731_s1 + $0x4f8] sm:$0xff]  ;;  %v2258_v47 = vpack.c.bf16 %v304_v39, %v298_v38  ;;  %v548_v39 = vld [vmem:[%s4731_s1 + $0x7f0] sm:$0xff] }
  0x6f   : > { %2031 = vmatpush1.bf16.msra.mxu0 %v2030_v49  ;;  %2097 = vmatprep.subr.bf16.mxu1 %v2096_v50  ;;  %v459_v49 = vld [vmem:[%s4731_s1 + $0x528] sm:$0xff] }
  0x70   : > { %2033 = vmatprep.subr.bf16.mxu0 %v2032_v54  ;;  %v835_v50 = vld [vmem:[%s4731_s1 + $0x10e8] sm:$0xff]  ;;  %v2116_v54 = vpack.c.bf16 %v459_v49, %v453_v48  ;;  %v500_v48 = vld [vmem:[%s4731_s1 + $0x670] sm:$0xff]  ;;  %v506_v49 = vld [vmem:[%s4731_s1 + $0x6a0] sm:$0xff] }
  0x71   : > { %v2052_v58 = vpack.c.bf16 %v841_v51, %v835_v50  ;;  %v310_v50 = vld [vmem:[%s4731_s1 + $0x80] sm:$0xff]  ;;  %v2134_v59 = vpack.c.bf16 %v506_v49, %v500_v48 }
  0x72   : > { %2099 = vmatpush1.bf16.msra.mxu1 %v2098_v60  ;;  %v465_v60 = vld [vmem:[%s4731_s1 + $0x558] sm:$0xff] }
  0x73   : > { %2035 = vmatpush1.bf16.msra.mxu0 %v2034_v61  ;;  %2101 = vmatprep.subr.bf16.mxu1 %v2100_v62  ;;  %v471_v61 = vld [vmem:[%s4731_s1 + $0x588] sm:$0xff] }
  0x74   : > { %2037 = vmatprep.subr.bf16.mxu0 %v2036_v2  ;;  %v847_v62 = vld [vmem:[%s4731_s1 + $0x1148] sm:$0xff]  ;;  %v2120_v2 = vpack.c.bf16 %v471_v61, %v465_v60 }
  0x75   : > { %v2056_v6 = vpack.c.bf16 %v853_v63, %v847_v62  ;;  %v518_v62 = vld [vmem:[%s4731_s1 + $0x700] sm:$0xff] }
  0x76   : > { %2103 = vmatpush1.bf16.msra.mxu1 %v2102_v8  ;;  %v477_v8 = vld [vmem:[%s4731_s1 + $0x5b8] sm:$0xff]  ;;  %v322_v63 = vld [vmem:[%s4731_s1 + $0xe0] sm:$0xff] }
  0x77   : > { %2039 = vmatpush1.bf16.msra.mxu0 %v2038_v9  ;;  %2105 = vmatprep.subr.bf16.mxu1 %v2104_v10  ;;  %v483_v9 = vld [vmem:[%s4731_s1 + $0x5e8] sm:$0xff] }
  0x78   : > { %2041 = vmatprep.subr.bf16.mxu0 %v2040_v14  ;;  %v859_v10 = vld [vmem:[%s4731_s1 + $0x11a8] sm:$0xff]  ;;  %v2124_v14 = vpack.c.bf16 %v483_v9, %v477_v8  ;;  %v524_v9 = vld [vmem:[%s4731_s1 + $0x730] sm:$0xff] }
  0x79   : > { %v2060_v24 = vpack.c.bf16 %v865_v11, %v859_v10  ;;  %v530_v10 = vld [vmem:[%s4731_s1 + $0x760] sm:$0xff] }
  0x7a   : > { %2107 = vmatpush1.bf16.msra.mxu1 %v2106_v26  ;;  %v489_v26 = vld [vmem:[%s4731_s1 + $0x618] sm:$0xff]  ;;  %v334_v11 = vld [vmem:[%s4731_s1 + $0x140] sm:$0xff] }
  0x7b   : > { %2043 = vmatpush1.bf16.msra.mxu0 %v2042_v27  ;;  %2109 = vmatprep.subr.bf16.mxu1 %v2108_v28  ;;  %v495_v27 = vld [vmem:[%s4731_s1 + $0x648] sm:$0xff] }
  0x7c   : > { %2045 = vmatprep.subr.bf16.mxu0 %v2044_v32  ;;  %v299_v28 = vld [vmem:[%s4731_s1 + $0x28] sm:$0xff]  ;;  %v2128_v32 = vpack.c.bf16 %v495_v27, %v489_v26  ;;  %v536_v27 = vld [vmem:[%s4731_s1 + $0x790] sm:$0xff] }
  0x7d   : > { %v2256_v37 = vpack.c.bf16 %v305_v29, %v299_v28  ;;  %v542_v28 = vld [vmem:[%s4731_s1 + $0x7c0] sm:$0xff]  ;;  %v352_v29 = vld [vmem:[%s4731_s1 + $0x1d0] sm:$0xff] }
  0x7e   : > { %2111 = vmatpush1.bf16.msra.mxu1 %v2110_v40  ;;  %v501_v40 = vld [vmem:[%s4731_s1 + $0x678] sm:$0xff]  ;;  %v2146_v35 = vpack.c.bf16 %v542_v28, %v536_v27  ;;  %v596_v28 = vld [vmem:[%s4731_s1 + $0x970] sm:$0xff] }
  0x7f   : > { %2047 = vmatpush1.bf16.msra.mxu0 %v2046_v41  ;;  %2113 = vmatprep.subr.bf16.mxu1 %v2112_v42  ;;  %v507_v41 = vld [vmem:[%s4731_s1 + $0x6a8] sm:$0xff] }
  0x80   : > { %2049 = vmatprep.subr.bf16.mxu0 %v2048_v46  ;;  %v311_v42 = vld [vmem:[%s4731_s1 + $0x88] sm:$0xff]  ;;  %v293_v46 = vld [vmem:[%s3043_s17 + $0x58] sm:$0xff]  ;;  %v2132_v51 = vpack.c.bf16 %v507_v41, %v501_v40  ;;  %v554_v40 = vld [vmem:[%s4731_s1 + $0x820] sm:$0xff] }
  0x81   : > { %v358_v41 = vld [vmem:[%s4731_s1 + $0x200] sm:$0xff]  ;;  %v2150_v48 = vpack.c.bf16 %v554_v40, %v548_v39  ;;  %v608_v40 = vld [vmem:[%s4731_s1 + $0x9d0] sm:$0xff] }
  0x82   : > { %2115 = vmatpush1.bf16.msra.mxu1 %v2114_v52  ;;  %v2260_v52 = vpack.c.bf16 %v317_v43, %v311_v42  ;;  %v364_v43 = vld [vmem:[%s4731_s1 + $0x230] sm:$0xff] }
  0x83   : > { %2051 = vmatpush1.bf16.msra.mxu0 %v2050_v53  ;;  %2117 = vmatprep.subr.bf16.mxu1 %v2116_v54  ;;  %v316_v53 = vld [vmem:[%s4731_s1 + $0xb0] sm:$0xff]  ;;  %v513_v54 = vld [vmem:[%s4731_s1 + $0x6d8] sm:$0xff]  ;;  %v2278_v49 = vpack.c.bf16 %v364_v43, %v358_v41  ;;  %v614_v41 = vld [vmem:[%s4731_s1 + $0xa00] sm:$0xff] }
  0x84   : > { %2053 = vmatprep.subr.bf16.mxu0 %v2052_v58  ;;  %v292_v58 = vld [vmem:[%s3043_s17 + $0x50] sm:$0xff]  ;;  %v2262_v60 = vpack.c.bf16 %v316_v53, %v310_v50  ;;  %v2136_v61 = vpack.c.bf16 %v519_v55, %v513_v54  ;;  %v370_v53 = vld [vmem:[%s4731_s1 + $0x260] sm:$0xff] }
  0x85   : > { %v376_v55 = vld [vmem:[%s4731_s1 + $0x290] sm:$0xff] }
  0x86   : > { %2119 = vmatpush1.bf16.msra.mxu1 %v2118_v0  ;;  %v2264_v0 = vpack.c.bf16 %v329_v57, %v323_v56  ;;  %v573_v56 = vld [vmem:[%s4731_s1 + $0x8b8] sm:$0xff]  ;;  %v579_v57 = vld [vmem:[%s4731_s1 + $0x8e8] sm:$0xff] }
  0x87   : > { %2055 = vmatpush1.bf16.msra.mxu0 %v2054_v1  ;;  %2121 = vmatprep.subr.bf16.mxu1 %v2120_v2  ;;  %v328_v1 = vld [vmem:[%s4731_s1 + $0x110] sm:$0xff]  ;;  %v525_v2 = vld [vmem:[%s4731_s1 + $0x738] sm:$0xff] }
  0x88   : > { %2057 = vmatprep.subr.bf16.mxu0 %v2056_v6  ;;  %v2266_v7 = vpack.c.bf16 %v328_v1, %v322_v63  ;;  %v2140_v8 = vpack.c.bf16 %v531_v3, %v525_v2  ;;  %v578_v63 = vld [vmem:[%s4731_s1 + $0x8e0] sm:$0xff]  ;;  %v388_v2 = vld [vmem:[%s4731_s1 + $0x2f0] sm:$0xff]  ;;  %v585_v3 = vld [vmem:[%s4731_s1 + $0x918] sm:$0xff] }
  0x8a   : > { %2123 = vmatpush1.bf16.msra.mxu1 %v2122_v12  ;;  %v2268_v12 = vpack.c.bf16 %v341_v5, %v335_v4  ;;  %v591_v4 = vld [vmem:[%s4731_s1 + $0x948] sm:$0xff] }
  0x8b   : > { %2059 = vmatpush1.bf16.msra.mxu0 %v2058_v13  ;;  %2125 = vmatprep.subr.bf16.mxu1 %v2124_v14  ;;  %v340_v13 = vld [vmem:[%s4731_s1 + $0x170] sm:$0xff]  ;;  %v537_v14 = vld [vmem:[%s4731_s1 + $0x798] sm:$0xff]  ;;  %v395_v5 = vld [vmem:[%s4731_s1 + $0x328] sm:$0xff] }
  0x8c   : > { %2061 = vmatprep.subr.bf16.mxu0 %v2060_v24  ;;  %v2142_v24 = vpack.c.bf16 %v530_v10, %v524_v9  ;;  %v2270_v25 = vpack.c.bf16 %v340_v13, %v334_v11  ;;  %v2144_v26 = vpack.c.bf16 %v543_v15, %v537_v14  ;;  %v2160_v9 = vpack.c.bf16 %v591_v4, %v585_v3  ;;  %v584_v10 = vld [vmem:[%s4731_s1 + $0x910] sm:$0xff]  ;;  %v590_v11 = vld [vmem:[%s4731_s1 + $0x940] sm:$0xff]  ;;  %v597_v15 = vld [vmem:[%s4731_s1 + $0x978] sm:$0xff] }
  0x8d   : > { %v400_v14 = vld [vmem:[%s4731_s1 + $0x350] sm:$0xff]  ;;  %v645_v4 = vld [vmem:[%s4731_s1 + $0xaf8] sm:$0xff] }
  0x8e   : > { %2127 = vmatpush1.bf16.msra.mxu1 %v2126_v30  ;;  %v549_v30 = vld [vmem:[%s4731_s1 + $0x7f8] sm:$0xff]  ;;  %v448_v3 = vld [vmem:[%s4731_s1 + $0x4d0] sm:$0xff] }
  0x8f   : > { %2063 = vmatpush1.bf16.msra.mxu0 %v2062_v31  ;;  %2129 = vmatprep.subr.bf16.mxu1 %v2128_v32  ;;  %v555_v31 = vld [vmem:[%s4731_s1 + $0x828] sm:$0xff] }
  0x90   : > { %2257 = vmatprep.subr.bf16.mxu0 %v2256_v37  ;;  %v359_v32 = vld [vmem:[%s4731_s1 + $0x208] sm:$0xff]  ;;  %v2148_v38 = vpack.c.bf16 %v555_v31, %v549_v30  ;;  %v412_v30 = vld [vmem:[%s4731_s1 + $0x3b0] sm:$0xff]  ;;  %v609_v31 = vld [vmem:[%s4731_s1 + $0x9d8] sm:$0xff] }
  0x91   : > { %1178 = vmatmul.mubr.f32.vlgmr.msra.gmra.mrb[4].mxu1 %v3198_v17  ;;  %v512_v17 = vld [vmem:[%s4731_s1 + $0x6d0] sm:$0xff]  ;;  %v2276_v42 = vpack.c.bf16 %v365_v33, %v359_v32  ;;  %v615_v32 = vld [vmem:[%s4731_s1 + $0xa08] sm:$0xff] }
  0x92   : > { %1101 = vmatmul.mubr.f32.vlgmr.msra.gmra.mrb[0].mxu0 %v286_v44  ;;  %2131 = vmatpush1.bf16.msra.mxu1 %v2130_v45  ;;  %v2138_v6 = vpack.c.bf16 %v518_v62, %v512_v17  ;;  %v561_v44 = vld [vmem:[%s4731_s1 + $0x858] sm:$0xff]  ;;  %v567_v45 = vld [vmem:[%s4731_s1 + $0x888] sm:$0xff]  ;;  %v2156_v17 = vpack.c.bf16 %v579_v57, %v573_v56  ;;  %v572_v62 = vld [vmem:[%s4731_s1 + $0x8b0] sm:$0xff]  ;;  %v2168_v39 = vpack.c.bf16 %v615_v32, %v609_v31 }
  0x93   : > { %2259 = vmatpush1.bf16.msra.mxu0 %v2258_v47  ;;  %1106 = vmatprep.mubr.f32.mxu0 %v293_v46  ;;  %v371_v46 = vld [vmem:[%s4731_s1 + $0x268] sm:$0xff]  ;;  %v377_v47 = vld [vmem:[%s4731_s1 + $0x298] sm:$0xff]  ;;  %v2152_v50 = vpack.c.bf16 %v567_v45, %v561_v44  ;;  %v424_v44 = vld [vmem:[%s4731_s1 + $0x410] sm:$0xff] }
  0x94   : > { %2133 = vmatprep.subr.bf16.mxu1 %v2132_v51  ;;  %2261 = vmatprep.subr.bf16.mxu0 %v2260_v52  ;;  %v560_v51 = vld [vmem:[%s4731_s1 + $0x850] sm:$0xff]  ;;  %v566_v52 = vld [vmem:[%s4731_s1 + $0x880] sm:$0xff]  ;;  %v2280_v54 = vpack.c.bf16 %v377_v47, %v371_v46  ;;  %v419_v33 = vld [vmem:[%s4731_s1 + $0x3e8] sm:$0xff] }
  0x95   : > { %1183 = vmatprep.mubr.f32.mxu1 %v3326_v21  ;;  %v621_v45 = vld [vmem:[%s4731_s1 + $0xa38] sm:$0xff]  ;;  %v627_v46 = vld [vmem:[%s4731_s1 + $0xa68] sm:$0xff]  ;;  %v436_v56 = vld [vmem:[%s4731_s1 + $0x470] sm:$0xff] }
  0x96   : > { %1107 = vmatmul.mubr.f32.gmra.mrb[2].mxu0 %v292_v58  ;;  %2135 = vmatpush1.bf16.msra.mxu1 %v2134_v59  ;;  %v383_v58 = vld [vmem:[%s4731_s1 + $0x2c8] sm:$0xff]  ;;  %v389_v59 = vld [vmem:[%s4731_s1 + $0x2f8] sm:$0xff]  ;;  %v472_v31 = vld [vmem:[%s4731_s1 + $0x590] sm:$0xff] }
  0x97   : > { %2263 = vmatpush1.bf16.msra.mxu0 %v2262_v60  ;;  %2137 = vmatprep.subr.bf16.mxu1 %v2136_v61  ;;  %v2154_v60 = vpack.c.bf16 %v566_v52, %v560_v51  ;;  %v2282_v61 = vpack.c.bf16 %v376_v55, %v370_v53  ;;  %v2284_v1 = vpack.c.bf16 %v389_v59, %v383_v58  ;;  %v431_v47 = vld [vmem:[%s4731_s1 + $0x448] sm:$0xff]  ;;  %v620_v52 = vld [vmem:[%s4731_s1 + $0xa30] sm:$0xff]  ;;  %v626_v53 = vld [vmem:[%s4731_s1 + $0xa60] sm:$0xff] }
  0x98   : > { %2265 = vmatprep.subr.bf16.mxu0 %v2264_v0  ;;  %1184 = vmatmul.mubr.f32.gmra.mrb[6].mxu1 %v3359_v34  ;;  %v382_v0 = vld [vmem:[%s4731_s1 + $0x2c0] sm:$0xff]  ;;  %v2172_v51 = vpack.c.bf16 %v627_v46, %v621_v45  ;;  %v633_v57 = vld [vmem:[%s4731_s1 + $0xa98] sm:$0xff]  ;;  %v639_v58 = vld [vmem:[%s4731_s1 + $0xac8] sm:$0xff] }
  0x99   : > { %1254 = vmatprep.mubr.f32.mxu1 %v3074_v19  ;;  %1408 = vmatprep.mubr.f32.mxu0 %v3064_v16  ;;  %v346_v19 = vld [vmem:[%s4731_s1 + $0x1a0] sm:$0xff]  ;;  %v2272_v16 = vpack.c.bf16 %v353_v23, %v347_v18  ;;  %v603_v18 = vld [vmem:[%s4731_s1 + $0x9a8] sm:$0xff]  ;;  %v669_v32 = vld [vmem:[%s4731_s1 + $0xbb8] sm:$0xff] }
  0x9a   : > { %2139 = vmatpush1.bf16.msra.mxu1 %v2138_v6  ;;  %v2274_v37 = vpack.c.bf16 %v352_v29, %v346_v19  ;;  %v401_v6 = vld [vmem:[%s4731_s1 + $0x358] sm:$0xff]  ;;  %v407_v23 = vld [vmem:[%s4731_s1 + $0x388] sm:$0xff]  ;;  %v2164_v27 = vpack.c.bf16 %v603_v18, %v597_v15  ;;  %v602_v19 = vld [vmem:[%s4731_s1 + $0x9a0] sm:$0xff] }
  0x9b   : > { %2267 = vmatpush1.bf16.msra.mxu0 %v2266_v7  ;;  %2141 = vmatprep.subr.bf16.mxu1 %v2140_v8  ;;  %v2158_v7 = vpack.c.bf16 %v578_v63, %v572_v62  ;;  %v2286_v8 = vpack.c.bf16 %v388_v2, %v382_v0  ;;  %v2288_v13 = vpack.c.bf16 %v401_v6, %v395_v5  ;;  %v443_v59 = vld [vmem:[%s4731_s1 + $0x4a8] sm:$0xff]  ;;  %v632_v63 = vld [vmem:[%s4731_s1 + $0xa90] sm:$0xff]  ;;  %v638_v0 = vld [vmem:[%s4731_s1 + $0xac0] sm:$0xff] }
  0x9c   : > { %2269 = vmatprep.subr.bf16.mxu0 %v2268_v12  ;;  %v394_v12 = vld [vmem:[%s4731_s1 + $0x320] sm:$0xff]  ;;  %v2176_v62 = vpack.c.bf16 %v639_v58, %v633_v57  ;;  %v651_v5 = vld [vmem:[%s4731_s1 + $0xb28] sm:$0xff]  ;;  %v460_v15 = vld [vmem:[%s4731_s1 + $0x530] sm:$0xff] }
  0x9d   : > { %v455_v6 = vld [vmem:[%s4731_s1 + $0x508] sm:$0xff]  ;;  %v657_v18 = vld [vmem:[%s4731_s1 + $0xb58] sm:$0xff]  ;;  %v484_v45 = vld [vmem:[%s4731_s1 + $0x5f0] sm:$0xff] }
  0x9e   : > { %2143 = vmatpush1.bf16.msra.mxu1 %v2142_v24  ;;  %v413_v24 = vld [vmem:[%s4731_s1 + $0x3b8] sm:$0xff]  ;;  %v496_v57 = vld [vmem:[%s4731_s1 + $0x650] sm:$0xff] }
  0x9f   : > { %2271 = vmatpush1.bf16.msra.mxu0 %v2270_v25  ;;  %2145 = vmatprep.subr.bf16.mxu1 %v2144_v26  ;;  %v2162_v25 = vpack.c.bf16 %v590_v11, %v584_v10  ;;  %v2290_v26 = vpack.c.bf16 %v400_v14, %v394_v12  ;;  %v2292_v29 = vpack.c.bf16 %v413_v24, %v407_v23  ;;  %v644_v11 = vld [vmem:[%s4731_s1 + $0xaf0] sm:$0xff]  ;;  %v650_v12 = vld [vmem:[%s4731_s1 + $0xb20] sm:$0xff]  ;;  %v663_v23 = vld [vmem:[%s4731_s1 + $0xb88] sm:$0xff] }
  0xa0   : > { %2273 = vmatprep.subr.bf16.mxu0 %v2272_v16  ;;  %v406_v16 = vld [vmem:[%s4731_s1 + $0x380] sm:$0xff]  ;;  %v2180_v10 = vpack.c.bf16 %v651_v5, %v645_v4  ;;  %v467_v24 = vld [vmem:[%s4731_s1 + $0x568] sm:$0xff]  ;;  %v681_v46 = vld [vmem:[%s4731_s1 + $0xc18] sm:$0xff] }
  0xa1   : > { %v693_v58 = vld [vmem:[%s4731_s1 + $0xc78] sm:$0xff]  ;;  %v508_v4 = vld [vmem:[%s4731_s1 + $0x6b0] sm:$0xff] }
  0xa2   : > { %2147 = vmatpush1.bf16.msra.mxu1 %v2146_v35  ;;  %v425_v35 = vld [vmem:[%s4731_s1 + $0x418] sm:$0xff] }
  0xa3   : > { %2275 = vmatpush1.bf16.msra.mxu0 %v2274_v37  ;;  %2149 = vmatprep.subr.bf16.mxu1 %v2148_v38  ;;  %v2166_v37 = vpack.c.bf16 %v602_v19, %v596_v28  ;;  %v2294_v38 = vpack.c.bf16 %v412_v30, %v406_v16  ;;  %v2296_v43 = vpack.c.bf16 %v425_v35, %v419_v33  ;;  %v656_v19 = vld [vmem:[%s4731_s1 + $0xb50] sm:$0xff]  ;;  %v662_v16 = vld [vmem:[%s4731_s1 + $0xb80] sm:$0xff]  ;;  %v675_v33 = vld [vmem:[%s4731_s1 + $0xbe8] sm:$0xff] }
  0xa4   : > { %2277 = vmatprep.subr.bf16.mxu0 %v2276_v42  ;;  %v418_v42 = vld [vmem:[%s4731_s1 + $0x3e0] sm:$0xff]  ;;  %v2184_v28 = vpack.c.bf16 %v663_v23, %v657_v18  ;;  %v479_v35 = vld [vmem:[%s4731_s1 + $0x5c8] sm:$0xff]  ;;  %v705_v5 = vld [vmem:[%s4731_s1 + $0xcd8] sm:$0xff] }
  0xa5   : > { %v514_v18 = vld [vmem:[%s4731_s1 + $0x6e0] sm:$0xff] }
  0xa6   : > { %2151 = vmatpush1.bf16.msra.mxu1 %v2150_v48  ;;  %v437_v48 = vld [vmem:[%s4731_s1 + $0x478] sm:$0xff] }
  0xa7   : > { %2279 = vmatpush1.bf16.msra.mxu0 %v2278_v49  ;;  %2153 = vmatprep.subr.bf16.mxu1 %v2152_v50  ;;  %v2170_v49 = vpack.c.bf16 %v614_v41, %v608_v40  ;;  %v2298_v50 = vpack.c.bf16 %v424_v44, %v418_v42  ;;  %v2300_v55 = vpack.c.bf16 %v437_v48, %v431_v47  ;;  %v668_v41 = vld [vmem:[%s4731_s1 + $0xbb0] sm:$0xff]  ;;  %v674_v42 = vld [vmem:[%s4731_s1 + $0xbe0] sm:$0xff]  ;;  %v687_v47 = vld [vmem:[%s4731_s1 + $0xc48] sm:$0xff] }
  0xa8   : > { %2281 = vmatprep.subr.bf16.mxu0 %v2280_v54  ;;  %v430_v54 = vld [vmem:[%s4731_s1 + $0x440] sm:$0xff]  ;;  %v2188_v40 = vpack.c.bf16 %v675_v33, %v669_v32  ;;  %v491_v48 = vld [vmem:[%s4731_s1 + $0x628] sm:$0xff] }
  0xa9   : > { %v735_v32 = vld [vmem:[%s4731_s1 + $0xdc8] sm:$0xff] }
  0xaa   : > { %2155 = vmatpush1.bf16.msra.mxu1 %v2154_v60  ;;  %v449_v60 = vld [vmem:[%s4731_s1 + $0x4d8] sm:$0xff]  ;;  %v539_v33 = vld [vmem:[%s4731_s1 + $0x7a8] sm:$0xff] }
  0xab   : > { %2283 = vmatpush1.bf16.msra.mxu0 %v2282_v61  ;;  %2157 = vmatprep.subr.bf16.mxu1 %v2156_v17  ;;  %v2174_v61 = vpack.c.bf16 %v626_v53, %v620_v52  ;;  %v2302_v17 = vpack.c.bf16 %v436_v56, %v430_v54  ;;  %v2304_v2 = vpack.c.bf16 %v449_v60, %v443_v59  ;;  %v680_v53 = vld [vmem:[%s4731_s1 + $0xc10] sm:$0xff]  ;;  %v686_v54 = vld [vmem:[%s4731_s1 + $0xc40] sm:$0xff]  ;;  %v699_v59 = vld [vmem:[%s4731_s1 + $0xca8] sm:$0xff] }
  0xac   : > { %2285 = vmatprep.subr.bf16.mxu0 %v2284_v1  ;;  %v442_v1 = vld [vmem:[%s4731_s1 + $0x4a0] sm:$0xff]  ;;  %v2192_v52 = vpack.c.bf16 %v687_v47, %v681_v46  ;;  %v503_v60 = vld [vmem:[%s4731_s1 + $0x688] sm:$0xff] }
  0xad   : > { %v747_v46 = vld [vmem:[%s4731_s1 + $0xe28] sm:$0xff] }
  0xae   : > { %2159 = vmatpush1.bf16.msra.mxu1 %v2158_v7  ;;  %v461_v7 = vld [vmem:[%s4731_s1 + $0x538] sm:$0xff]  ;;  %v551_v47 = vld [vmem:[%s4731_s1 + $0x808] sm:$0xff] }
  0xaf   : > { %2287 = vmatpush1.bf16.msra.mxu0 %v2286_v8  ;;  %2161 = vmatprep.subr.bf16.mxu1 %v2160_v9  ;;  %v2178_v8 = vpack.c.bf16 %v638_v0, %v632_v63  ;;  %v2306_v9 = vpack.c.bf16 %v448_v3, %v442_v1  ;;  %v2308_v14 = vpack.c.bf16 %v461_v7, %v455_v6  ;;  %v692_v0 = vld [vmem:[%s4731_s1 + $0xc70] sm:$0xff]  ;;  %v698_v1 = vld [vmem:[%s4731_s1 + $0xca0] sm:$0xff]  ;;  %v711_v6 = vld [vmem:[%s4731_s1 + $0xd08] sm:$0xff] }
  0xb0   : > { %2289 = vmatprep.subr.bf16.mxu0 %v2288_v13  ;;  %v454_v13 = vld [vmem:[%s4731_s1 + $0x500] sm:$0xff]  ;;  %v2196_v63 = vpack.c.bf16 %v699_v59, %v693_v58  ;;  %v4018_v7 = vld [vmem:[%s3043_s17 + $0x10] sm:$0xff]  ;;  %v759_v58 = vld [vmem:[%s4731_s1 + $0xe88] sm:$0xff] }
  0xb1   : > { %v563_v59 = vld [vmem:[%s4731_s1 + $0x868] sm:$0xff] }
  0xb2   : > { %2163 = vmatpush1.bf16.msra.mxu1 %v2162_v25  ;;  %v473_v25 = vld [vmem:[%s4731_s1 + $0x598] sm:$0xff] }
  0xb3   : > { %2291 = vmatpush1.bf16.msra.mxu0 %v2290_v26  ;;  %2165 = vmatprep.subr.bf16.mxu1 %v2164_v27  ;;  %v2182_v26 = vpack.c.bf16 %v650_v12, %v644_v11  ;;  %v2310_v27 = vpack.c.bf16 %v460_v15, %v454_v13  ;;  %v2312_v30 = vpack.c.bf16 %v473_v25, %v467_v24  ;;  %v710_v15 = vld [vmem:[%s4731_s1 + $0xd00] sm:$0xff]  ;;  %v520_v24 = vld [vmem:[%s4731_s1 + $0x710] sm:$0xff]  ;;  %v717_v25 = vld [vmem:[%s4731_s1 + $0xd38] sm:$0xff] }
  0xb4   : > { %2293 = vmatprep.subr.bf16.mxu0 %v2292_v29  ;;  %v466_v29 = vld [vmem:[%s4731_s1 + $0x560] sm:$0xff]  ;;  %v2198_v11 = vpack.c.bf16 %v698_v1, %v692_v0  ;;  %v2200_v13 = vpack.c.bf16 %v711_v6, %v705_v5  ;;  %v771_v5 = vld [vmem:[%s4731_s1 + $0xee8] sm:$0xff] }
  0xb5   : > { %v758_v0 = vld [vmem:[%s4731_s1 + $0xe80] sm:$0xff]  ;;  %v575_v6 = vld [vmem:[%s4731_s1 + $0x8c8] sm:$0xff] }
  0xb6   : > { %2167 = vmatpush1.bf16.msra.mxu1 %v2166_v37  ;;  %v485_v37 = vld [vmem:[%s4731_s1 + $0x5f8] sm:$0xff]  ;;  %v562_v1 = vld [vmem:[%s4731_s1 + $0x860] sm:$0xff] }
  0xb7   : > { %2295 = vmatpush1.bf16.msra.mxu0 %v2294_v38  ;;  %2169 = vmatprep.subr.bf16.mxu1 %v2168_v39  ;;  %v2186_v38 = vpack.c.bf16 %v662_v16, %v656_v19  ;;  %v2314_v39 = vpack.c.bf16 %v472_v31, %v466_v29  ;;  %v2316_v44 = vpack.c.bf16 %v485_v37, %v479_v35  ;;  %v716_v29 = vld [vmem:[%s4731_s1 + $0xd30] sm:$0xff]  ;;  %v729_v31 = vld [vmem:[%s4731_s1 + $0xd98] sm:$0xff] }
  0xb8   : > { %2297 = vmatprep.subr.bf16.mxu0 %v2296_v43  ;;  %v478_v43 = vld [vmem:[%s4731_s1 + $0x5c0] sm:$0xff]  ;;  %v545_v35 = vld [vmem:[%s4731_s1 + $0x7d8] sm:$0xff] }
  0xb9   : > { %v2582_v37 = vld [vmem:[%s3043_s17 + $0x18] sm:$0xff] }
  0xba   : > { %2171 = vmatpush1.bf16.msra.mxu1 %v2170_v49  ;;  %v497_v49 = vld [vmem:[%s4731_s1 + $0x658] sm:$0xff] }
  0xbb   : > { %2299 = vmatpush1.bf16.msra.mxu0 %v2298_v50  ;;  %2173 = vmatprep.subr.bf16.mxu1 %v2172_v51  ;;  %v2190_v50 = vpack.c.bf16 %v674_v42, %v668_v41  ;;  %v2318_v51 = vpack.c.bf16 %v484_v45, %v478_v43  ;;  %v2320_v56 = vpack.c.bf16 %v497_v49, %v491_v48  ;;  %v734_v41 = vld [vmem:[%s4731_s1 + $0xdc0] sm:$0xff]  ;;  %v741_v45 = vld [vmem:[%s4731_s1 + $0xdf8] sm:$0xff] }
  0xbc   : > { %2301 = vmatprep.subr.bf16.mxu0 %v2300_v55  ;;  %v490_v55 = vld [vmem:[%s4731_s1 + $0x620] sm:$0xff]  ;;  %v2336_v43 = vpack.c.bf16 %v545_v35, %v539_v33  ;;  %v557_v48 = vld [vmem:[%s4731_s1 + $0x838] sm:$0xff] }
  0xbd   : > { %v538_v42 = vld [vmem:[%s4731_s1 + $0x7a0] sm:$0xff] }
  0xbe   : > { %2175 = vmatpush1.bf16.msra.mxu1 %v2174_v61  ;;  %v509_v61 = vld [vmem:[%s4731_s1 + $0x6b8] sm:$0xff] }
  0xbf   : > { %2303 = vmatpush1.bf16.msra.mxu0 %v2302_v17  ;;  %2177 = vmatprep.subr.bf16.mxu1 %v2176_v62  ;;  %v2194_v17 = vpack.c.bf16 %v686_v54, %v680_v53  ;;  %v2322_v62 = vpack.c.bf16 %v496_v57, %v490_v55  ;;  %v2324_v3 = vpack.c.bf16 %v509_v61, %v503_v60  ;;  %v746_v53 = vld [vmem:[%s4731_s1 + $0xe20] sm:$0xff]  ;;  %v753_v57 = vld [vmem:[%s4731_s1 + $0xe58] sm:$0xff] }
  0xc0   : > { %2305 = vmatprep.subr.bf16.mxu0 %v2304_v2  ;;  %v502_v2 = vld [vmem:[%s4731_s1 + $0x680] sm:$0xff]  ;;  %v2340_v55 = vpack.c.bf16 %v557_v48, %v551_v47  ;;  %v569_v60 = vld [vmem:[%s4731_s1 + $0x898] sm:$0xff] }
  0xc1   : > { %v2326_v12 = vpack.c.bf16 %v508_v4, %v502_v2  ;;  %v550_v54 = vld [vmem:[%s4731_s1 + $0x800] sm:$0xff]  ;;  %v2344_v2 = vpack.c.bf16 %v569_v60, %v563_v59  ;;  %v765_v4 = vld [vmem:[%s4731_s1 + $0xeb8] sm:$0xff] }
  0xc2   : > { %2179 = vmatpush1.bf16.msra.mxu1 %v2178_v8  ;;  %v515_v8 = vld [vmem:[%s4731_s1 + $0x6e8] sm:$0xff] }
  0xc3   : > { %2307 = vmatpush1.bf16.msra.mxu0 %v2306_v9  ;;  %2181 = vmatprep.subr.bf16.mxu1 %v2180_v10  ;;  %v521_v9 = vld [vmem:[%s4731_s1 + $0x718] sm:$0xff]  ;;  %v2581_v10 = vld [vmem:[%s3043_s17] sm:$0xff] }
  0xc4   : > { %2309 = vmatprep.subr.bf16.mxu0 %v2308_v14  ;;  %v704_v14 = vld [vmem:[%s4731_s1 + $0xcd0] sm:$0xff]  ;;  %v2328_v23 = vpack.c.bf16 %v521_v9, %v515_v8  ;;  %v581_v8 = vld [vmem:[%s4731_s1 + $0x8f8] sm:$0xff] }
  0xc5   : > { %v2202_v19 = vpack.c.bf16 %v710_v15, %v704_v14  ;;  %v574_v14 = vld [vmem:[%s4731_s1 + $0x8c0] sm:$0xff]  ;;  %v2348_v15 = vpack.c.bf16 %v581_v8, %v575_v6 }
  0xc6   : > { %2183 = vmatpush1.bf16.msra.mxu1 %v2182_v26  ;;  %v723_v26 = vld [vmem:[%s4731_s1 + $0xd68] sm:$0xff] }
  0xc7   : > { %2311 = vmatpush1.bf16.msra.mxu0 %v2310_v27  ;;  %2185 = vmatprep.subr.bf16.mxu1 %v2184_v28  ;;  %v527_v27 = vld [vmem:[%s4731_s1 + $0x748] sm:$0xff]  ;;  %v533_v28 = vld [vmem:[%s4731_s1 + $0x778] sm:$0xff]  ;;  %v2204_v16 = vpack.c.bf16 %v723_v26, %v717_v25 }
  0xc8   : > { %2313 = vmatprep.subr.bf16.mxu0 %v2312_v30  ;;  %v722_v30 = vld [vmem:[%s4731_s1 + $0xd60] sm:$0xff]  ;;  %v587_v25 = vld [vmem:[%s4731_s1 + $0x928] sm:$0xff]  ;;  %v593_v26 = vld [vmem:[%s4731_s1 + $0x958] sm:$0xff] }
  0xca   : > { %2187 = vmatpush1.bf16.msra.mxu1 %v2186_v38  ;;  %v2206_v38 = vpack.c.bf16 %v722_v30, %v716_v29  ;;  %v586_v29 = vld [vmem:[%s4731_s1 + $0x920] sm:$0xff]  ;;  %v2352_v30 = vpack.c.bf16 %v593_v26, %v587_v25 }
  0xcb   : > { %2315 = vmatpush1.bf16.msra.mxu0 %v2314_v39  ;;  %2189 = vmatprep.subr.bf16.mxu1 %v2188_v40  ;;  %v2208_v40 = vpack.c.bf16 %v735_v32, %v729_v31  ;;  %v599_v31 = vld [vmem:[%s4731_s1 + $0x988] sm:$0xff]  ;;  %v605_v32 = vld [vmem:[%s4731_s1 + $0x9b8] sm:$0xff] }
  0xcc   : > { %2317 = vmatprep.subr.bf16.mxu0 %v2316_v44  ;;  %v544_v44 = vld [vmem:[%s4731_s1 + $0x7d0] sm:$0xff] }
  0xce   : > { %2191 = vmatpush1.bf16.msra.mxu1 %v2190_v50  ;;  %v2338_v50 = vpack.c.bf16 %v544_v44, %v538_v42  ;;  %v801_v42 = vld [vmem:[%s4731_s1 + $0xfd8] sm:$0xff]  ;;  %v611_v44 = vld [vmem:[%s4731_s1 + $0x9e8] sm:$0xff] }
  0xcf   : > { %2319 = vmatpush1.bf16.msra.mxu0 %v2318_v51  ;;  %2193 = vmatprep.subr.bf16.mxu1 %v2192_v52  ;;  %v2212_v51 = vpack.c.bf16 %v747_v46, %v741_v45  ;;  %v740_v52 = vld [vmem:[%s4731_s1 + $0xdf0] sm:$0xff]  ;;  %v617_v45 = vld [vmem:[%s4731_s1 + $0xa18] sm:$0xff] }
  0xd0   : > { %2321 = vmatprep.subr.bf16.mxu0 %v2320_v56  ;;  %v556_v56 = vld [vmem:[%s4731_s1 + $0x830] sm:$0xff]  ;;  %v2214_v61 = vpack.c.bf16 %v746_v53, %v740_v52  ;;  %v2360_v52 = vpack.c.bf16 %v617_v45, %v611_v44 }
  0xd1   : > { %1255 = vmatmul.mubr.f32.vlgmr.msra.gmra.mrb[4].mxu1 %v4018_v7  ;;  %v616_v53 = vld [vmem:[%s4731_s1 + $0xa10] sm:$0xff] }
  0xd2   : > { %2195 = vmatpush1.bf16.msra.mxu1 %v2194_v17  ;;  %1409 = vmatmul.mubr.f32.vlgmr.msra.gmra.mrb[4].mxu0 %v2581_v10  ;;  %v2342_v17 = vpack.c.bf16 %v556_v56, %v550_v54  ;;  %v813_v54 = vld [vmem:[%s4731_s1 + $0x1038] sm:$0xff]  ;;  %v623_v56 = vld [vmem:[%s4731_s1 + $0xa48] sm:$0xff] }
  0xd3   : > { %2323 = vmatpush1.bf16.msra.mxu0 %v2322_v62  ;;  %2197 = vmatprep.subr.bf16.mxu1 %v2196_v63  ;;  %v2216_v62 = vpack.c.bf16 %v759_v58, %v753_v57  ;;  %v752_v63 = vld [vmem:[%s4731_s1 + $0xe50] sm:$0xff]  ;;  %v629_v57 = vld [vmem:[%s4731_s1 + $0xa78] sm:$0xff] }
  0xd4   : > { %2325 = vmatprep.subr.bf16.mxu0 %v2324_v3  ;;  %1260 = vmatprep.mubr.f32.mxu1 %v3323_v20  ;;  %v2330_v20 = vpack.c.bf16 %v520_v24, %v514_v18  ;;  %v568_v3 = vld [vmem:[%s4731_s1 + $0x890] sm:$0xff]  ;;  %v2218_v9 = vpack.c.bf16 %v758_v0, %v752_v63  ;;  %v783_v24 = vld [vmem:[%s4731_s1 + $0xf48] sm:$0xff]  ;;  %v2364_v63 = vpack.c.bf16 %v629_v57, %v623_v56  ;;  %v682_v56 = vld [vmem:[%s4731_s1 + $0xc20] sm:$0xff] }
  0xd5   : > { %1414 = vmatprep.mubr.f32.mxu0 %v3326_v21  ;;  %1261 = vmatmul.mubr.f32.gmra.mrb[6].mxu1 %v3329_v22  ;;  %v526_v21 = vld [vmem:[%s4731_s1 + $0x740] sm:$0xff]  ;;  %v2332_v22 = vpack.c.bf16 %v533_v28, %v527_v27  ;;  %v2346_v10 = vpack.c.bf16 %v568_v3, %v562_v1  ;;  %v580_v18 = vld [vmem:[%s4731_s1 + $0x8f0] sm:$0xff]  ;;  %v825_v1 = vld [vmem:[%s4731_s1 + $0x1098] sm:$0xff] }
  0xd6   : > { %2199 = vmatpush1.bf16.msra.mxu1 %v2198_v11  ;;  %1415 = vmatmul.mubr.f32.gmra.mrb[6].mxu0 %v3359_v34  ;;  %v532_v34 = vld [vmem:[%s4731_s1 + $0x770] sm:$0xff]  ;;  %v2220_v11 = vpack.c.bf16 %v771_v5, %v765_v4  ;;  %v2350_v28 = vpack.c.bf16 %v580_v18, %v574_v14  ;;  %v635_v3 = vld [vmem:[%s4731_s1 + $0xaa8] sm:$0xff]  ;;  %v641_v4 = vld [vmem:[%s4731_s1 + $0xad8] sm:$0xff] }
  0xd7   : > { %2327 = vmatpush1.bf16.msra.mxu0 %v2326_v12  ;;  %2201 = vmatprep.subr.bf16.mxu1 %v2200_v13  ;;  %v2334_v39 = vpack.c.bf16 %v532_v34, %v526_v21  ;;  %v764_v12 = vld [vmem:[%s4731_s1 + $0xeb0] sm:$0xff]  ;;  %v770_v13 = vld [vmem:[%s4731_s1 + $0xee0] sm:$0xff]  ;;  %v795_v34 = vld [vmem:[%s4731_s1 + $0xfa8] sm:$0xff] }
  0xd8   : > { %2329 = vmatprep.subr.bf16.mxu0 %v2328_v23  ;;  %1331 = vmatprep.mubr.f32.mxu1 %v3362_v36  ;;  %v728_v36 = vld [vmem:[%s4731_s1 + $0xd90] sm:$0xff]  ;;  %v777_v23 = vld [vmem:[%s4731_s1 + $0xf18] sm:$0xff]  ;;  %v2222_v27 = vpack.c.bf16 %v770_v13, %v764_v12  ;;  %v2368_v12 = vpack.c.bf16 %v641_v4, %v635_v3  ;;  %v647_v18 = vld [vmem:[%s4731_s1 + $0xb08] sm:$0xff] }
  0xd9   : > { %1485 = vmatprep.mubr.f32.mxu0 %v2582_v37  ;;  %v2210_v49 = vpack.c.bf16 %v734_v41, %v728_v36  ;;  %v592_v21 = vld [vmem:[%s4731_s1 + $0x950] sm:$0xff]  ;;  %v2356_v36 = vpack.c.bf16 %v605_v32, %v599_v31  ;;  %v837_v14 = vld [vmem:[%s4731_s1 + $0x10f8] sm:$0xff] }
  0xda   : > { %2203 = vmatpush1.bf16.msra.mxu1 %v2202_v19  ;;  %v2224_v19 = vpack.c.bf16 %v783_v24, %v777_v23  ;;  %v2354_v35 = vpack.c.bf16 %v592_v21, %v586_v29  ;;  %v604_v41 = vld [vmem:[%s4731_s1 + $0x9b0] sm:$0xff]  ;;  %v653_v23 = vld [vmem:[%s4731_s1 + $0xb38] sm:$0xff]  ;;  %v659_v21 = vld [vmem:[%s4731_s1 + $0xb68] sm:$0xff] }
  0xdb   : > { %2331 = vmatpush1.bf16.msra.mxu0 %v2330_v20  ;;  %2205 = vmatprep.subr.bf16.mxu1 %v2204_v16  ;;  %v776_v20 = vld [vmem:[%s4731_s1 + $0xf10] sm:$0xff]  ;;  %v782_v16 = vld [vmem:[%s4731_s1 + $0xf40] sm:$0xff]  ;;  %v849_v29 = vld [vmem:[%s4731_s1 + $0x1158] sm:$0xff] }
  0xdc   : > { %2333 = vmatprep.subr.bf16.mxu0 %v2332_v22  ;;  %v789_v22 = vld [vmem:[%s4731_s1 + $0xf78] sm:$0xff]  ;;  %v2226_v33 = vpack.c.bf16 %v782_v16, %v776_v20  ;;  %v628_v0 = vld [vmem:[%s4731_s1 + $0xa70] sm:$0xff]  ;;  %v2372_v20 = vpack.c.bf16 %v653_v23, %v647_v18  ;;  %v731_v18 = vld [vmem:[%s4731_s1 + $0xda8] sm:$0xff] }
  0xdd   : > { %v2228_v37 = vpack.c.bf16 %v795_v34, %v789_v22  ;;  %v640_v13 = vld [vmem:[%s4731_s1 + $0xad0] sm:$0xff]  ;;  %v665_v22 = vld [vmem:[%s4731_s1 + $0xb98] sm:$0xff] }
  0xde   : > { %2207 = vmatpush1.bf16.msra.mxu1 %v2206_v38  ;;  %v788_v38 = vld [vmem:[%s4731_s1 + $0xf70] sm:$0xff]  ;;  %v2584_v3 = vld [vmem:[%s3043_s17 + $0x58] sm:$0xff] }
  0xdf   : > { %2335 = vmatpush1.bf16.msra.mxu0 %v2334_v39  ;;  %2209 = vmatprep.subr.bf16.mxu1 %v2208_v40  ;;  %v794_v39 = vld [vmem:[%s4731_s1 + $0xfa0] sm:$0xff]  ;;  %v652_v16 = vld [vmem:[%s4731_s1 + $0xb30] sm:$0xff]  ;;  %v737_v23 = vld [vmem:[%s4731_s1 + $0xdd8] sm:$0xff] }
  0xe0   : > { %2337 = vmatprep.subr.bf16.mxu0 %v2336_v43  ;;  %v598_v40 = vld [vmem:[%s4731_s1 + $0x980] sm:$0xff]  ;;  %v807_v43 = vld [vmem:[%s4731_s1 + $0x1008] sm:$0xff]  ;;  %v2230_v46 = vpack.c.bf16 %v794_v39, %v788_v38  ;;  %v2376_v38 = vpack.c.bf16 %v665_v22, %v659_v21  ;;  %v664_v39 = vld [vmem:[%s4731_s1 + $0xb90] sm:$0xff] }
  0xe1   : > { %v2358_v47 = vpack.c.bf16 %v604_v41, %v598_v40  ;;  %v2232_v48 = vpack.c.bf16 %v807_v43, %v801_v42  ;;  %v861_v40 = vld [vmem:[%s4731_s1 + $0x11b8] sm:$0xff]  ;;  %v671_v41 = vld [vmem:[%s4731_s1 + $0xbc8] sm:$0xff]  ;;  %v688_v57 = vld [vmem:[%s4731_s1 + $0xc50] sm:$0xff] }
  0xe2   : > { %2211 = vmatpush1.bf16.msra.mxu1 %v2210_v49  ;;  %v800_v49 = vld [vmem:[%s4731_s1 + $0xfd0] sm:$0xff]  ;;  %v677_v42 = vld [vmem:[%s4731_s1 + $0xbf8] sm:$0xff]  ;;  %v755_v22 = vld [vmem:[%s4731_s1 + $0xe68] sm:$0xff] }
  0xe3   : > { %2339 = vmatpush1.bf16.msra.mxu0 %v2338_v50  ;;  %2213 = vmatprep.subr.bf16.mxu1 %v2212_v51  ;;  %v806_v50 = vld [vmem:[%s4731_s1 + $0x1000] sm:$0xff]  ;;  %v748_v21 = vld [vmem:[%s4731_s1 + $0xe30] sm:$0xff] }
  0xe4   : > { %2341 = vmatprep.subr.bf16.mxu0 %v2340_v55  ;;  %v610_v51 = vld [vmem:[%s4731_s1 + $0x9e0] sm:$0xff]  ;;  %v819_v55 = vld [vmem:[%s4731_s1 + $0x1068] sm:$0xff]  ;;  %v2234_v58 = vpack.c.bf16 %v806_v50, %v800_v49  ;;  %v2380_v49 = vpack.c.bf16 %v677_v42, %v671_v41  ;;  %v676_v50 = vld [vmem:[%s4731_s1 + $0xbf0] sm:$0xff] }
  0xe5   : > { %v2362_v59 = vpack.c.bf16 %v616_v53, %v610_v51  ;;  %v2236_v60 = vpack.c.bf16 %v819_v55, %v813_v54  ;;  %v683_v51 = vld [vmem:[%s4731_s1 + $0xc28] sm:$0xff]  ;;  %v766_v42 = vld [vmem:[%s4731_s1 + $0xec0] sm:$0xff] }
  0xe6   : > { %2215 = vmatpush1.bf16.msra.mxu1 %v2214_v61  ;;  %v812_v61 = vld [vmem:[%s4731_s1 + $0x1030] sm:$0xff] }
  0xe7   : > { %2343 = vmatpush1.bf16.msra.mxu0 %v2342_v17  ;;  %2217 = vmatprep.subr.bf16.mxu1 %v2216_v62  ;;  %v818_v17 = vld [vmem:[%s4731_s1 + $0x1060] sm:$0xff] }
  0xe8   : > { %2345 = vmatprep.subr.bf16.mxu0 %v2344_v2  ;;  %v622_v62 = vld [vmem:[%s4731_s1 + $0xa40] sm:$0xff]  ;;  %v831_v2 = vld [vmem:[%s4731_s1 + $0x10c8] sm:$0xff]  ;;  %v2238_v5 = vpack.c.bf16 %v818_v17, %v812_v61  ;;  %v700_v17 = vld [vmem:[%s4731_s1 + $0xcb0] sm:$0xff] }
  0xe9   : > { %v2366_v6 = vpack.c.bf16 %v628_v0, %v622_v62  ;;  %v2240_v8 = vpack.c.bf16 %v831_v2, %v825_v1  ;;  %v694_v61 = vld [vmem:[%s4731_s1 + $0xc80] sm:$0xff]  ;;  %v713_v0 = vld [vmem:[%s4731_s1 + $0xd18] sm:$0xff] }
  0xea   : > { %2219 = vmatpush1.bf16.msra.mxu1 %v2218_v9  ;;  %v824_v9 = vld [vmem:[%s4731_s1 + $0x1090] sm:$0xff]  ;;  %v4389_v1 = vld [vmem:[%s3043_s17 + $0x20] sm:$0xff]  ;;  %v2390_v2 = vpack.c.bf16 %v700_v17, %v694_v61  ;;  %v815_v17 = vld [vmem:[%s4731_s1 + $0x1048] sm:$0xff] }
  0xeb   : > { %2347 = vmatpush1.bf16.msra.mxu0 %v2346_v10  ;;  %2221 = vmatprep.subr.bf16.mxu1 %v2220_v11  ;;  %v830_v10 = vld [vmem:[%s4731_s1 + $0x10c0] sm:$0xff]  ;;  %v808_v61 = vld [vmem:[%s4731_s1 + $0x1010] sm:$0xff] }
  0xec   : > { %2349 = vmatprep.subr.bf16.mxu0 %v2348_v15  ;;  %v634_v11 = vld [vmem:[%s4731_s1 + $0xaa0] sm:$0xff]  ;;  %v843_v15 = vld [vmem:[%s4731_s1 + $0x1128] sm:$0xff]  ;;  %v2242_v24 = vpack.c.bf16 %v830_v10, %v824_v9  ;;  %v725_v9 = vld [vmem:[%s4731_s1 + $0xd78] sm:$0xff] }
  0xed   : > { %v2370_v25 = vpack.c.bf16 %v640_v13, %v634_v11  ;;  %v2244_v26 = vpack.c.bf16 %v843_v15, %v837_v14  ;;  %v4408_v10 = vld [vmem:[%s3043_s17 + $0x50] sm:$0xff]  ;;  %v2587_v11 = vld [vmem:[%s3043_s17 + $0x40] sm:$0xff] }
  0xee   : > { %2223 = vmatpush1.bf16.msra.mxu1 %v2222_v27  ;;  %v836_v27 = vld [vmem:[%s4731_s1 + $0x10f0] sm:$0xff]  ;;  %v718_v14 = vld [vmem:[%s4731_s1 + $0xd40] sm:$0xff] }
  0xef   : > { %2351 = vmatpush1.bf16.msra.mxu0 %v2350_v28  ;;  %2225 = vmatprep.subr.bf16.mxu1 %v2224_v19  ;;  %v842_v28 = vld [vmem:[%s4731_s1 + $0x1120] sm:$0xff]  ;;  %v724_v15 = vld [vmem:[%s4731_s1 + $0xd70] sm:$0xff] }
  0xf0   : > { %2353 = vmatprep.subr.bf16.mxu0 %v2352_v30  ;;  %v646_v19 = vld [vmem:[%s4731_s1 + $0xb00] sm:$0xff]  ;;  %v855_v30 = vld [vmem:[%s4731_s1 + $0x1188] sm:$0xff]  ;;  %v2246_v34 = vpack.c.bf16 %v842_v28, %v836_v27  ;;  %v736_v28 = vld [vmem:[%s4731_s1 + $0xdd0] sm:$0xff] }
  0xf1   : > { %v2374_v31 = vpack.c.bf16 %v652_v16, %v646_v19  ;;  %v2248_v32 = vpack.c.bf16 %v855_v30, %v849_v29  ;;  %v730_v27 = vld [vmem:[%s4731_s1 + $0xda0] sm:$0xff]  ;;  %v743_v19 = vld [vmem:[%s4731_s1 + $0xe08] sm:$0xff] }
  0xf2   : > { %2227 = vmatpush1.bf16.msra.mxu1 %v2226_v33  ;;  %v848_v33 = vld [vmem:[%s4731_s1 + $0x1150] sm:$0xff]  ;;  %v2402_v16 = vpack.c.bf16 %v736_v28, %v730_v27  ;;  %v742_v30 = vld [vmem:[%s4731_s1 + $0xe00] sm:$0xff] }
  0xf3   : > { %2355 = vmatpush1.bf16.msra.mxu0 %v2354_v35  ;;  %2229 = vmatprep.subr.bf16.mxu1 %v2228_v37  ;;  %v854_v35 = vld [vmem:[%s4731_s1 + $0x1180] sm:$0xff] }
  0xf4   : > { %2357 = vmatprep.subr.bf16.mxu0 %v2356_v36  ;;  %v658_v37 = vld [vmem:[%s4731_s1 + $0xb60] sm:$0xff]  ;;  %v867_v36 = vld [vmem:[%s4731_s1 + $0x11e8] sm:$0xff]  ;;  %v2250_v43 = vpack.c.bf16 %v854_v35, %v848_v33  ;;  %v760_v35 = vld [vmem:[%s4731_s1 + $0xe90] sm:$0xff] }
  0xf5   : > { %v2378_v44 = vpack.c.bf16 %v664_v39, %v658_v37  ;;  %v2252_v45 = vpack.c.bf16 %v867_v36, %v861_v40  ;;  %v754_v33 = vld [vmem:[%s4731_s1 + $0xe60] sm:$0xff]  ;;  %v773_v39 = vld [vmem:[%s4731_s1 + $0xef8] sm:$0xff] }
  0xf6   : > { %2231 = vmatpush1.bf16.msra.mxu1 %v2230_v46  ;;  %v860_v46 = vld [vmem:[%s4731_s1 + $0x11b0] sm:$0xff]  ;;  %v2410_v36 = vpack.c.bf16 %v760_v35, %v754_v33  ;;  %v871_v33 = vld [vmem:[%s4732_s2 + $0x8] sm:$0xff] }
  0xf7   : > { %2359 = vmatpush1.bf16.msra.mxu0 %v2358_v47  ;;  %2233 = vmatprep.subr.bf16.mxu1 %v2232_v48  ;;  %v866_v47 = vld [vmem:[%s4731_s1 + $0x11e0] sm:$0xff]  ;;  %v876_v35 = vld [vmem:[%s4732_s2 + $0x30] sm:$0xff] }
  0xf8   : > { %2361 = vmatprep.subr.bf16.mxu0 %v2360_v52  ;;  %v670_v48 = vld [vmem:[%s4731_s1 + $0xbc0] sm:$0xff]  ;;  %v689_v52 = vld [vmem:[%s4731_s1 + $0xc58] sm:$0xff]  ;;  %v2254_v53 = vpack.c.bf16 %v866_v47, %v860_v46 }
  0xf9   : > { %v2382_v54 = vpack.c.bf16 %v676_v50, %v670_v48  ;;  %v2384_v55 = vpack.c.bf16 %v689_v52, %v683_v51  ;;  %v778_v48 = vld [vmem:[%s4731_s1 + $0xf20] sm:$0xff]  ;;  %v791_v50 = vld [vmem:[%s4731_s1 + $0xf88] sm:$0xff]  ;;  %v797_v51 = vld [vmem:[%s4731_s1 + $0xfb8] sm:$0xff] }
  0xfa   : > { %2235 = vmatpush1.bf16.msra.mxu1 %v2234_v58  ;;  %v695_v58 = vld [vmem:[%s4731_s1 + $0xc88] sm:$0xff] }
  0xfb   : > { %2363 = vmatpush1.bf16.msra.mxu0 %v2362_v59  ;;  %2237 = vmatprep.subr.bf16.mxu1 %v2236_v60  ;;  %v701_v59 = vld [vmem:[%s4731_s1 + $0xcb8] sm:$0xff]  ;;  %v2386_v60 = vpack.c.bf16 %v688_v57, %v682_v56  ;;  %v803_v56 = vld [vmem:[%s4731_s1 + $0xfe8] sm:$0xff] }
  0xfc   : > { %2365 = vmatprep.subr.bf16.mxu0 %v2364_v63  ;;  %v2388_v62 = vpack.c.bf16 %v701_v59, %v695_v58  ;;  %v707_v63 = vld [vmem:[%s4731_s1 + $0xce8] sm:$0xff]  ;;  %v809_v57 = vld [vmem:[%s4731_s1 + $0x1018] sm:$0xff] }
  0xfd   : > { %v2392_v4 = vpack.c.bf16 %v713_v0, %v707_v63  ;;  %v2424_v59 = vpack.c.bf16 %v809_v57, %v803_v56  ;;  %v873_v56 = vld [vmem:[%s4732_s2 + $0x18] sm:$0xff] }
  0xfe   : > { %2239 = vmatpush1.bf16.msra.mxu1 %v2238_v5  ;;  %v706_v5 = vld [vmem:[%s4731_s1 + $0xce0] sm:$0xff] }
  0xff   : > { %2367 = vmatpush1.bf16.msra.mxu0 %v2366_v6  ;;  %2241 = vmatprep.subr.bf16.mxu1 %v2240_v8  ;;  %v712_v6 = vld [vmem:[%s4731_s1 + $0xd10] sm:$0xff]  ;;  %v2585_v8 = vld [vmem:[%s3043_s17 + $0x48] sm:$0xff] }
 0x100   : > { %2369 = vmatprep.subr.bf16.mxu0 %v2368_v12  ;;  %v2394_v12 = vpack.c.bf16 %v712_v6, %v706_v5  ;;  %v833_v5 = vld [vmem:[%s4731_s1 + $0x10d8] sm:$0xff] }
 0x102   : > { %2243 = vmatpush1.bf16.msra.mxu1 %v2242_v24  ;;  %v2588_v24 = vld [vmem:[%s3043_s17 + $0x28] sm:$0xff]  ;;  %s4678_s17 = scalar_lea.hbm %s4735_s5, %s2518_s13 }
 0x103   : > { %2371 = vmatpush1.bf16.msra.mxu0 %v2370_v25  ;;  %2245 = vmatprep.subr.bf16.mxu1 %v2244_v26  ;;  %v2398_v25 = vpack.c.bf16 %v724_v15, %v718_v14  ;;  %v2400_v26 = vpack.c.bf16 %v737_v23, %v731_v18  ;;  %v838_v23 = vld [vmem:[%s4731_s1 + $0x1100] sm:$0xff] }
 0x104   : > { %2373 = vmatprep.subr.bf16.mxu0 %v2372_v20  ;;  %v749_v20 = vld [vmem:[%s4731_s1 + $0xe38] sm:$0xff] }
 0x105   : > { %v2404_v29 = vpack.c.bf16 %v749_v20, %v743_v19  ;;  %v850_v19 = vld [vmem:[%s4731_s1 + $0x1160] sm:$0xff]  ;;  %v856_v20 = vld [vmem:[%s4731_s1 + $0x1190] sm:$0xff] }
 0x106   : > { %2247 = vmatpush1.bf16.msra.mxu1 %v2246_v34  ;;  %v761_v34 = vld [vmem:[%s4731_s1 + $0xe98] sm:$0xff] }
 0x107   : > { %2375 = vmatpush1.bf16.msra.mxu0 %v2374_v31  ;;  %2249 = vmatprep.subr.bf16.mxu1 %v2248_v32  ;;  %v2406_v31 = vpack.c.bf16 %v748_v21, %v742_v30  ;;  %v2408_v32 = vpack.c.bf16 %v761_v34, %v755_v22  ;;  %v2442_v30 = vpack.c.bf16 %v856_v20, %v850_v19  ;;  %v862_v22 = vld [vmem:[%s4731_s1 + $0x11c0] sm:$0xff]  ;;  %v868_v34 = vld [vmem:[%s4731_s1 + $0x11f0] sm:$0xff] }
 0x108   : > { %2377 = vmatprep.subr.bf16.mxu0 %v2376_v38  ;;  %v767_v38 = vld [vmem:[%s4731_s1 + $0xec8] sm:$0xff] }
 0x109   : > { %v2412_v41 = vpack.c.bf16 %v773_v39, %v767_v38 }
 0x10a   : > { %2251 = vmatpush1.bf16.msra.mxu1 %v2250_v43  ;;  %v772_v43 = vld [vmem:[%s4731_s1 + $0xef0] sm:$0xff] }
 0x10b   : > { %2379 = vmatpush1.bf16.msra.mxu0 %v2378_v44  ;;  %2253 = vmatprep.subr.bf16.mxu1 %v2252_v45  ;;  %v779_v44 = vld [vmem:[%s4731_s1 + $0xf28] sm:$0xff]  ;;  %v785_v45 = vld [vmem:[%s4731_s1 + $0xf58] sm:$0xff]  ;;  %v2414_v46 = vpack.c.bf16 %v772_v43, %v766_v42 }
 0x10c   : > { %2381 = vmatprep.subr.bf16.mxu0 %v2380_v49  ;;  %v2416_v47 = vpack.c.bf16 %v785_v45, %v779_v44  ;;  %v784_v49 = vld [vmem:[%s4731_s1 + $0xf50] sm:$0xff] }
 0x10d   : > { %v2418_v52 = vpack.c.bf16 %v784_v49, %v778_v48 }
 0x10e   : > { %2255 = vmatpush1.bf16.msra.mxu1 %v2254_v53  ;;  %v2420_v53 = vpack.c.bf16 %v797_v51, %v791_v50 }
 0x10f   : > { %2383 = vmatpush1.bf16.msra.mxu0 %v2382_v54  ;;  %2448 = vmatprep.subr.bf16.mxu1 %v2384_v55  ;;  %v790_v54 = vld [vmem:[%s4731_s1 + $0xf80] sm:$0xff] }
 0x110   : > { %2385 = vmatprep.subr.bf16.mxu0 %v2384_v55  ;;  %v796_v55 = vld [vmem:[%s4731_s1 + $0xfb0] sm:$0xff] }
 0x111   : > { %1332 = vmatmul.mubr.f32.vlgmr.msra.gmra.mrb[4].mxu1 %v4389_v1  ;;  %v2422_v58 = vpack.c.bf16 %v796_v55, %v790_v54  ;;  %v878_v54 = vld [vmem:[%s4732_s2 + $0x40] sm:$0xff] }
 0x112   : > { %1486 = vmatmul.mubr.f32.vlgmr.msra.gmra.mrb[4].mxu0 %v4018_v7  ;;  %2464 = vmatpush1.bf16.msra.mxu1 %v2386_v60  ;;  %v719_v7 = vld [vmem:[%s4731_s1 + $0xd48] sm:$0xff] }
 0x113   : > { %2387 = vmatpush1.bf16.msra.mxu0 %v2386_v60  ;;  %1337 = vmatprep.mubr.f32.mxu1 %v2584_v3  ;;  %v2396_v13 = vpack.c.bf16 %v725_v9, %v719_v7  ;;  %v802_v60 = vld [vmem:[%s4731_s1 + $0xfe0] sm:$0xff]  ;;  %v832_v9 = vld [vmem:[%s4731_s1 + $0x10d0] sm:$0xff] }
 0x114   : > { %1491 = vmatprep.mubr.f32.mxu0 %v2585_v8  ;;  %2389 = vmatprep.subr.bf16.mxu0 %v2388_v62  ;;  %v2426_v63 = vpack.c.bf16 %v808_v61, %v802_v60  ;;  %v826_v7 = vld [vmem:[%s4731_s1 + $0x10a0] sm:$0xff]  ;;  %v879_v60 = vld [vmem:[%s4732_s2 + $0x48] sm:$0xff]  ;;  %v881_v61 = vld [vmem:[%s4732_s2 + $0x58] sm:$0xff] }
 0x115   : > { %1338 = vmatmul.mubr.f32.gmra.mrb[6].mxu1 %v4408_v10  ;;  %2449 = vmatprep.subr.bf16.mxu1 %v2388_v62  ;;  %v821_v62 = vld [vmem:[%s4731_s1 + $0x1078] sm:$0xff]  ;;  %v2434_v15 = vpack.c.bf16 %v832_v9, %v826_v7 }
 0x116   : > { %1492 = vmatmul.mubr.f32.gmra.mrb[6].mxu0 %v2587_v11  ;;  %2465 = vmatpush1.bf16.msra.mxu1 %v2390_v2  ;;  %v2428_v0 = vpack.c.bf16 %v821_v62, %v815_v17 }
 0x117   : > { %2391 = vmatpush1.bf16.msra.mxu0 %v2390_v2  ;;  %2450 = vmatprep.subr.bf16.mxu1 %v2392_v4  ;;  %v814_v2 = vld [vmem:[%s4731_s1 + $0x1040] sm:$0xff] }
 0x118   : > { %2393 = vmatprep.subr.bf16.mxu0 %v2392_v4  ;;  %1562 = vmatprep.mubr.f32.mxu0 %v2588_v24  ;;  %v827_v4 = vld [vmem:[%s4731_s1 + $0x10a8] sm:$0xff]  ;;  %v844_v24 = vld [vmem:[%s4731_s1 + $0x1130] sm:$0xff] }
 0x119   : > { %1568 = vmatprep.mubr.f32.mxu1 %v2584_v3  ;;  %v820_v3 = vld [vmem:[%s4731_s1 + $0x1070] sm:$0xff]  ;;  %v2432_v8 = vpack.c.bf16 %v833_v5, %v827_v4  ;;  %v2438_v27 = vpack.c.bf16 %v844_v24, %v838_v23 }
 0x11a   : > { %2466 = vmatpush1.bf16.msra.mxu1 %v2394_v12  ;;  %v2430_v6 = vpack.c.bf16 %v820_v3, %v814_v2  ;;  %v874_v2 = vld [vmem:[%s4732_s2 + $0x20] sm:$0xff] }
 0x11b   : > { %2395 = vmatpush1.bf16.msra.mxu0 %v2394_v12  ;;  %2451 = vmatprep.subr.bf16.mxu1 %v2396_v13  ;;  %v839_v12 = vld [vmem:[%s4731_s1 + $0x1108] sm:$0xff] }
 0x11c   : > { %2397 = vmatprep.subr.bf16.mxu0 %v2396_v13  ;;  %v845_v13 = vld [vmem:[%s4731_s1 + $0x1138] sm:$0xff] }
 0x11d   : > { %v2436_v18 = vpack.c.bf16 %v845_v13, %v839_v12 }
 0x11e   : > { %2467 = vmatpush1.bf16.msra.mxu1 %v2398_v25 }
 0x11f   : > { %2399 = vmatpush1.bf16.msra.mxu0 %v2398_v25  ;;  %2452 = vmatprep.subr.bf16.mxu1 %v2400_v26  ;;  %v851_v25 = vld [vmem:[%s4731_s1 + $0x1168] sm:$0xff] }
 0x120   : > { %2401 = vmatprep.subr.bf16.mxu0 %v2400_v26  ;;  %v857_v26 = vld [vmem:[%s4731_s1 + $0x1198] sm:$0xff] }
 0x121   : > { %v2440_v28 = vpack.c.bf16 %v857_v26, %v851_v25 }
 0x122   : > { %2468 = vmatpush1.bf16.msra.mxu1 %v2402_v16 }
 0x123   : > { %2403 = vmatpush1.bf16.msra.mxu0 %v2402_v16  ;;  %2453 = vmatprep.subr.bf16.mxu1 %v2404_v29  ;;  %v863_v16 = vld [vmem:[%s4731_s1 + $0x11c8] sm:$0xff] }
 0x124   : > { %2405 = vmatprep.subr.bf16.mxu0 %v2404_v29  ;;  %v4455_v37 = vpop.f32.mrb[0].mxu1  ;;  %v869_v29 = vld [vmem:[%s4731_s1 + $0x11f8] sm:$0xff] }
 0x125   : > { %v4463_v40 = vpop.f32.mrb[1].mxu1  ;;  %v2444_v21 = vpack.c.bf16 %v869_v29, %v863_v16 }
 0x126   : > { %2469 = vmatpush1.bf16.msra.mxu1 %v2406_v31  ;;  %v951_v39 = vadd.f32 %v4463_v40, %v871_v33 }
 0x127   : > { %2407 = vmatpush1.bf16.msra.mxu0 %v2406_v31  ;;  %2454 = vmatprep.subr.bf16.mxu1 %v2408_v32  ;;  %v2446_v31 = vpack.c.bf16 %v868_v34, %v862_v22 }
 0x128   : > { %2409 = vmatprep.subr.bf16.mxu0 %v2408_v32  ;;  %v870_v32 = vld [vmem:[%s4732_s2] sm:$0xff] }
 0x129   : > { %v949_v38 = vadd.f32 %v4455_v37, %v870_v32 }
 0x12a   : > { %2470 = vmatpush1.bf16.msra.mxu1 %v2410_v36 }
 0x12b   : > { %2411 = vmatpush1.bf16.msra.mxu0 %v2410_v36  ;;  %2455 = vmatprep.subr.bf16.mxu1 %v2412_v41  ;;  %v954_v11 = vpop.f32.mrb[2].mxu1 }
 0x12c   : > { %2413 = vmatprep.subr.bf16.mxu0 %v2412_v41  ;;  %v956_v14 = vpop.f32.mrb[3].mxu1 }
 0x12e   : > { %2471 = vmatpush1.bf16.msra.mxu1 %v2414_v46 }
 0x12f   : > { %2415 = vmatpush1.bf16.msra.mxu0 %v2414_v46  ;;  %2456 = vmatprep.subr.bf16.mxu1 %v2416_v47 }
 0x130   : > { %2417 = vmatprep.subr.bf16.mxu0 %v2416_v47 }
 0x132   : > { %2472 = vmatpush1.bf16.msra.mxu1 %v2418_v52 }
 0x133   : > { %2419 = vmatpush1.bf16.msra.mxu0 %v2418_v52  ;;  %2457 = vmatprep.subr.bf16.mxu1 %v2420_v53 }
 0x134   : > { %2421 = vmatprep.subr.bf16.mxu0 %v2420_v53  ;;  %v872_v53 = vld [vmem:[%s4732_s2 + $0x10] sm:$0xff] }
 0x136   : > { %2473 = vmatpush1.bf16.msra.mxu1 %v2422_v58 }
 0x137   : > { %2423 = vmatpush1.bf16.msra.mxu0 %v2422_v58  ;;  %2458 = vmatprep.subr.bf16.mxu1 %v2424_v59 }
 0x138   : > { %2425 = vmatprep.subr.bf16.mxu0 %v2424_v59  ;;  %v880_v59 = vld [vmem:[%s4732_s2 + $0x50] sm:$0xff] }
 0x13a   : > { %2474 = vmatpush1.bf16.msra.mxu1 %v2426_v63 }
 0x13b   : > { %2427 = vmatpush1.bf16.msra.mxu0 %v2426_v63  ;;  %2459 = vmatprep.subr.bf16.mxu1 %v2428_v0 }
 0x13c   : > { %2429 = vmatprep.subr.bf16.mxu0 %v2428_v0 }
 0x13e   : > { %2475 = vmatpush1.bf16.msra.mxu1 %v2430_v6 }
 0x13f   : > { %2431 = vmatpush1.bf16.msra.mxu0 %v2430_v6  ;;  %2460 = vmatprep.subr.bf16.mxu1 %v2432_v8 }
 0x140   : > { %2433 = vmatprep.subr.bf16.mxu0 %v2432_v8  ;;  %v875_v8 = vld [vmem:[%s4732_s2 + $0x28] sm:$0xff] }
 0x142   : > { %2476 = vmatpush1.bf16.msra.mxu1 %v2434_v15 }
 0x143   : > { %2435 = vmatpush1.bf16.msra.mxu0 %v2434_v15  ;;  %2461 = vmatprep.subr.bf16.mxu1 %v2436_v18 }
 0x144   : > { %2437 = vmatprep.subr.bf16.mxu0 %v2436_v18 }
 0x146   : > { %2477 = vmatpush1.bf16.msra.mxu1 %v2438_v27 }
 0x147   : > { %2439 = vmatpush1.bf16.msra.mxu0 %v2438_v27  ;;  %2462 = vmatprep.subr.bf16.mxu1 %v2440_v28 }
 0x148   : > { %2441 = vmatprep.subr.bf16.mxu0 %v2440_v28 }
 0x14a   : > { %2478 = vmatpush1.bf16.msra.mxu1 %v2442_v30 }
 0x14b   : > { %2443 = vmatpush1.bf16.msra.mxu0 %v2442_v30  ;;  %2463 = vmatprep.subr.bf16.mxu1 %v2444_v21 }
 0x14c   : > { %2445 = vmatprep.subr.bf16.mxu0 %v2444_v21 }
 0x14e   : > { %2479 = vmatpush1.bf16.msra.mxu1 %v2446_v31 }
 0x14f   : > { %2447 = vmatpush1.bf16.msra.mxu0 %v2446_v31 }
 0x151   : > { %1569 = vmatmul.mubr.f32.vlgmr.msra.gmra.mrb[8].mxu1 %v4408_v10  ;;  %v955_v10 = vadd.f32 %v954_v11, %v876_v35 }
 0x152   : > { %1563 = vmatmul.mubr.f32.vlgmr.msra.gmra.mrb[4].mxu0 %v4389_v1  ;;  %v877_v1 = vld [vmem:[%s4732_s2 + $0x38] sm:$0xff] }
 0x153   : > { %v957_v44 = vadd.f32 %v956_v14, %v877_v1 }
 0x165   : > { %v1102_v36 = vpop.f32.mrb[0].mxu0 }
 0x166   : > { %v2481_v41 = vadd.f32 %v1102_v36, %v949_v38  ;;  %v1104_v42 = vpop.f32.mrb[1].mxu0 }
 0x167   : > { %v2483_v43 = vadd.f32 %v1104_v42, %v951_v39 }
 0x169   : > { %v1108_v45 = vpop.f32.mrb[2].mxu0  ;;  %v1575_v57 = vadd.f32 %v2483_v43, %v2481_v41 }
 0x16a   : > { %v2485_v46 = vadd.f32 %v1108_v45, %v955_v10  ;;  %v1110_v47 = vpop.f32.mrb[3].mxu0 }
 0x16b   : > { %v2487_v48 = vadd.f32 %v1110_v47, %v957_v44 }
 0x16d   : > { %v1582_v17 = vadd.f32 %v2487_v48, %v2485_v46 }
 0x1e4   : > { %v1333_v49 = vpop.f32.mrb[4].mxu1 }
 0x1e5   : > { %v1335_v50 = vpop.f32.mrb[5].mxu1  ;;  %v2488_v55 = vadd.f32 %v1333_v49, %v872_v53 }
 0x1e6   : > { %v2489_v63 = vadd.f32 %v1335_v50, %v873_v56 }
 0x1e7   : > { %v1576_v62 = vadd.f32 %v2488_v55, %v1575_v57 }
 0x1e8   : > { %v1339_v51 = vpop.f32.mrb[6].mxu1 }
 0x1e9   : > { %v1493_v37 = vpop.f32.mrb[6].mxu0  ;;  %v1341_v52 = vpop.f32.mrb[7].mxu1  ;;  %v2490_v58 = vadd.f32 %v1339_v51, %v878_v54  ;;  %v1577_v12 = vadd.f32 %v2489_v63, %v1576_v62 }
 0x1ea   : > { %v1495_v40 = vpop.f32.mrb[7].mxu0  ;;  %v2494_v0 = vadd.f32 %v1493_v37, %v880_v59  ;;  %v2491_v4 = vadd.f32 %v1341_v52, %v879_v60 }
 0x1eb   : > { %v1583_v3 = vadd.f32 %v2490_v58, %v1582_v17  ;;  %v2496_v5 = vadd.f32 %v1495_v40, %v881_v61  ;;  %v1650_v61 = vlaneseq }
 0x1ed   : > { %v1584_v23 = vadd.f32 %v2491_v4, %v1583_v3 }
 0x224   : > { %v1570_v6 = vpop.f32.mrb[8].mxu1 }
 0x225   : > { %v1564_v7 = vpop.f32.mrb[4].mxu0  ;;  %v2495_v9 = vadd.f32 %v2494_v0, %v1570_v6  ;;  %v1572_v11 = vpop.f32.mrb[9].mxu1  ;;  %v1651_v0 = vshrl.u32 %v1650_v61, 7 }
 0x226   : > { %v2492_v13 = vadd.f32 %v1564_v7, %v874_v2  ;;  %v1566_v14 = vpop.f32.mrb[5].mxu0  ;;  %v2497_v15 = vadd.f32 %v2496_v5, %v1572_v11  ;;  %v1692_v11 = vld [vmem:[%s4734_s4] sm:$0x3f] }
 0x227   : > { %v2493_v18 = vadd.f32 %v1566_v14, %v875_v8  ;;  %v1585_v25 = vadd.f32 %v2495_v9, %v1584_v23  ;;  %v1652_v3 = vsub.s32 0, %v1651_v0  ;;  %v1660_v5 = vsub.s32 2, %v1651_v0  ;;  %v1648_v8 = vld [vmem:[%s4733_s3] sm:$0x3f] }
 0x228   : > { %v1578_v24 = vadd.f32 %v2492_v13, %v1577_v12  ;;  %v1664_v6 = vsub.s32 3, %v1651_v0  ;;  %v1668_v7 = vsub.s32 4, %v1651_v0 }
 0x229   : > { %v1586_v27 = vadd.f32 %v2497_v15, %v1585_v25  ;;  %v1653_v12 = vrot.slane %v1648_v8, %v1652_v3  ;;  %v1661_v14 = vrot.slane %v1648_v8, %v1660_v5  ;;  %v1697_v25 = vrot.slane %v1692_v11, %v1652_v3 }
 0x22a   : > { %v1579_v26 = vadd.f32 %v2493_v18, %v1578_v24  ;;  %v1669_v23 = vrot.slane %v1648_v8, %v1668_v7 }
 0x22c   : > { %1580 = vadd.xlane.f32.xlu0 %v1579_v26 }
 0x230   : > { %1587 = vadd.xlane.f32.xlu0 %v1586_v27 }
 0x2b9   : > { %v1581_v28 = vpop.xlane.xlu0 %1580 }
 0x2ba   : > { %v1590_v19 = vmul.f32 0.0013020834, %v1581_v28 }
 0x2bc   : > { %v4607_v20 = vsub.f32 %v2481_v41, %v1590_v19  ;;  %v4609_v16 = vsub.f32 %v2483_v43, %v1590_v19  ;;  %v4611_v29 = vsub.f32 %v2488_v55, %v1590_v19  ;;  %v4613_v21 = vsub.f32 %v2489_v63, %v1590_v19 }
 0x2bd   : > { %v1588_v30 = vpop.xlane.xlu0 %1587  ;;  %v4619_v32 = vsub.f32 %v2492_v13, %v1590_v19  ;;  %v1597_v10 = vsub.f32 %v2493_v18, %v1590_v19 }
 0x2be   : > { %v1591_v22 = vmul.f32 0.0013020834, %v1588_v30  ;;  %v1604_v34 = vmul.f32 %v4607_v20, %v4607_v20  ;;  %v1605_v31 = vmul.f32 %v4609_v16, %v4609_v16  ;;  %v1606_v33 = vmul.f32 %v4611_v29, %v4611_v29 }
 0x2bf   : > { %v1607_v41 = vmul.f32 %v4613_v21, %v4613_v21  ;;  %v1608_v45 = vmul.f32 %v4619_v32, %v4619_v32  ;;  %v1609_v50 = vmul.f32 %v1597_v10, %v1597_v10 }
 0x2c0   : > { %v1616_v35 = vadd.f32 %v1605_v31, %v1604_v34  ;;  %v4623_v38 = vsub.f32 %v2485_v46, %v1591_v22  ;;  %v4625_v39 = vsub.f32 %v2487_v48, %v1591_v22  ;;  %v4627_v36 = vsub.f32 %v2490_v58, %v1591_v22 }
 0x2c1   : > { %v4631_v42 = vsub.f32 %v2491_v4, %v1591_v22  ;;  %v4639_v47 = vsub.f32 %v2495_v9, %v1591_v22  ;;  %v4643_v37 = vsub.f32 %v2497_v15, %v1591_v22  ;;  %v1656_v4 = vsub.s32 1, %v1651_v0 }
 0x2c2   : > { %v1617_v1 = vadd.f32 %v1616_v35, %v1606_v33  ;;  %v1610_v43 = vmul.f32 %v4623_v38, %v4623_v38  ;;  %v1611_v44 = vmul.f32 %v4625_v39, %v4625_v39  ;;  %v1612_v48 = vmul.f32 %v4627_v36, %v4627_v36 }
 0x2c3   : > { %v1613_v52 = vmul.f32 %v4631_v42, %v4631_v42  ;;  %v1614_v54 = vmul.f32 %v4639_v47, %v4639_v47  ;;  %v1615_v56 = vmul.f32 %v4643_v37, %v4643_v37  ;;  %v1672_v9 = vsub.s32 5, %v1651_v0 }
 0x2c4   : > { %v1618_v46 = vadd.f32 %v1617_v1, %v1607_v41  ;;  %v1623_v49 = vadd.f32 %v1611_v44, %v1610_v43  ;;  %v1657_v13 = vrot.slane %v1648_v8, %v1656_v4  ;;  %v1665_v15 = vrot.slane %v1648_v8, %v1664_v6 }
 0x2c5   : > { %v1673_v24 = vrot.slane %v1648_v8, %v1672_v9  ;;  %v1701_v26 = vrot.slane %v1692_v11, %v1656_v4  ;;  %v1705_v31 = vrot.slane %v1692_v11, %v1660_v5  ;;  %v1709_v33 = vrot.slane %v1692_v11, %v1664_v6 }
 0x2c6   : > { %v1619_v51 = vadd.f32 %v1618_v46, %v1608_v45  ;;  %v1624_v40 = vadd.f32 %v1623_v49, %v1612_v48  ;;  %v1713_v1 = vrot.slane %v1692_v11, %v1668_v7  ;;  %v1717_v43 = vrot.slane %v1692_v11, %v1672_v9 }
 0x2c8   : > { %v1620_v53 = vadd.f32 %v1619_v51, %v1609_v50  ;;  %v1625_v55 = vadd.f32 %v1624_v40, %v1613_v52 }
 0x2ca   : > { %1621 = vadd.xlane.f32.xlu1 %v1620_v53  ;;  %v1626_v57 = vadd.f32 %v1625_v55, %v1614_v54 }
 0x2cc   : > { %v1627_v58 = vadd.f32 %v1626_v57, %v1615_v56 }
 0x2ce   : > { %1628 = vadd.xlane.f32.xlu1 %v1627_v58 }
 0x357   : > { %v1622_v59 = vpop.xlane.xlu1 %1621 }
 0x358   : > { %v1630_v60 = vmul.f32 0.0013020834, %v1622_v59 }
 0x35a   : > { %v1632_v17 = vadd.f32 1e-12, %v1630_v60 }
 0x35b   : > { %v1629_v62 = vpop.xlane.xlu1 %1628 }
 0x35c   : > { %2576 = vrsqrt.f32 %v1632_v17  ;;  %v1631_v63 = vmul.f32 0.0013020834, %v1629_v62 }
 0x35e   : > { %v1633_v2 = vadd.f32 1e-12, %v1631_v63 }
 0x360   : > { %2578 = vrsqrt.f32 %v1633_v2 }
 0x366   : > { %v2577_v18 = vpop.eup %2576 }
 0x367   : > { %v1636_v27 = vmul.f32 %v2577_v18, %v4607_v20  ;;  %v1637_v28 = vmul.f32 %v2577_v18, %v4609_v16  ;;  %v1638_v19 = vmul.f32 %v2577_v18, %v4611_v29  ;;  %v1639_v30 = vmul.f32 %v2577_v18, %v4613_v21 }
 0x368   : > { %v1640_v22 = vmul.f32 %v2577_v18, %v4619_v32  ;;  %v1641_v34 = vmul.f32 %v2577_v18, %v1597_v10 }
 0x369   : > { %v1680_v35 = vmul.f32 %v1653_v12, %v1636_v27  ;;  %v1681_v41 = vmul.f32 %v1657_v13, %v1637_v28  ;;  %v1682_v45 = vmul.f32 %v1661_v14, %v1638_v19  ;;  %v1683_v46 = vmul.f32 %v1665_v15, %v1639_v30 }
 0x36a   : > { %v2579_v44 = vpop.eup %2578  ;;  %v1684_v20 = vmul.f32 %v1669_v23, %v1640_v22  ;;  %v1685_v16 = vmul.f32 %v1673_v24, %v1641_v34 }
 0x36b   : > { %v1642_v29 = vmul.f32 %v2579_v44, %v4623_v38  ;;  %v1643_v21 = vmul.f32 %v2579_v44, %v4625_v39  ;;  %v1644_v32 = vmul.f32 %v2579_v44, %v4627_v36  ;;  %v1645_v10 = vmul.f32 %v2579_v44, %v4631_v42 }
 0x36c   : > { %v1646_v48 = vmul.f32 %v2579_v44, %v4639_v47  ;;  %v1647_v49 = vmul.f32 %v2579_v44, %v4643_v37  ;;  %v1724_v50 = vadd.f32 %v1697_v25, %v1680_v35  ;;  %v1725_v51 = vadd.f32 %v1701_v26, %v1681_v41 }
 0x36d   : > { %v1686_v52 = vmul.f32 %v1653_v12, %v1642_v29  ;;  %v1687_v40 = vmul.f32 %v1657_v13, %v1643_v21  ;;  %v1688_v53 = vmul.f32 %v1661_v14, %v1644_v32  ;;  %v1689_v54 = vmul.f32 %v1665_v15, %v1645_v10 }
 0x36e   : > { %v1690_v38 = vmul.f32 %v1669_v23, %v1646_v48  ;;  %v1691_v55 = vmul.f32 %v1673_v24, %v1647_v49  ;;  %v1726_v39 = vadd.f32 %v1705_v31, %v1682_v45  ;;  %v1727_v56 = vadd.f32 %v1709_v33, %v1683_v46  ;;  %1736 = vst [vmem:[%s262_s14] sm:$0xff] %v1724_v50 }
 0x36f   : > { %1737 = vst [vmem:[%s262_s14 + $0x8] sm:$0xff] %v1725_v51  ;;  %v1728_v36 = vadd.f32 %v1713_v1, %v1684_v20  ;;  %v1729_v42 = vadd.f32 %v1717_v43, %v1685_v16  ;;  %v1730_v57 = vadd.f32 %v1697_v25, %v1686_v52  ;;  %v1731_v47 = vadd.f32 %v1701_v26, %v1687_v40 }
 0x370   : > { %v1732_v37 = vadd.f32 %v1705_v31, %v1688_v53  ;;  %v1733_v58 = vadd.f32 %v1709_v33, %v1689_v54  ;;  %v1734_v59 = vadd.f32 %v1713_v1, %v1690_v38  ;;  %v1735_v60 = vadd.f32 %v1717_v43, %v1691_v55  ;;  %1738 = vst [vmem:[%s262_s14 + $0x10] sm:$0xff] %v1726_v39 }
 0x371   : > { %1739 = vst [vmem:[%s262_s14 + $0x18] sm:$0xff] %v1727_v56  ;;  %1740 = vst [vmem:[%s262_s14 + $0x20] sm:$0xff] %v1728_v36 }
 0x372   : > { %1741 = vst [vmem:[%s262_s14 + $0x28] sm:$0xff] %v1729_v42  ;;  %1742 = vst [vmem:[%s262_s14 + $0x30] sm:$0xff] %v1730_v57 }
 0x373   : > { %1743 = vst [vmem:[%s262_s14 + $0x38] sm:$0xff] %v1731_v47  ;;  %1744 = vst [vmem:[%s262_s14 + $0x40] sm:$0xff] %v1732_v37 }
 0x374   : > { %1745 = vst [vmem:[%s262_s14 + $0x48] sm:$0xff] %v1733_v58  ;;  %1746 = vst [vmem:[%s262_s14 + $0x50] sm:$0xff] %v1734_v59 }
 0x375   : > { %1747 = vst [vmem:[%s262_s14 + $0x58] sm:$0xff] %v1735_v60 }
 0x376   : > { %2602 = shalt.err (!%p2599_p5)
}
 0x377   : > { %s2603_s7 = scalar_lea.hbm %s4678_s17, 1536  ;;  %s2607_s10 = scalar_lea.hbm %s4735_s5, 3072 }
 0x378   : > { %p2604_p6 = scmp.ne.s32.totalorder %s4678_s17, %s2603_s7  ;;  %p2608_p10 = scmp.lt.u32.totalorder %s4678_s17, %s4735_s5 }
 0x379   : > { %p2609_p11 = scmp.lt.u32.totalorder %s2607_s10, %s2603_s7  ;;  %p2611_p13 = scmp.lt.u32.totalorder %s2603_s7, %s4678_s17 }
 0x37a   : > { %p2605_p7 = pnand %p2604_p6, %p2742_p4 }
 0x37b   : > { %p2610_p12 = por %p2609_p11, %p2608_p10 }
 0x37c   : > { %p2606_p9 = pneg %p2605_p7 }
 0x37d   : > { %p2612_p0 = por %p2611_p13, %p2610_p12 }
 0x37f   : > { %p2613_p1 = pnand %p2612_p0, %p2606_p9 }
 0x381   : > { %2616 = shalt.err (!%p2613_p1)
}
 0x382   : > { %s2670_s14 = smov 768   ;;  %s2671_s21 = smov 48  }
 0x383   : > { %2519 = dma.vmem_to_hbm [thread:$0]  (%p2742_p4), %s4680_s15, 1536, %s4678_s17, %s4684_s24, %s2670_s14, %s2670_s14, %s2671_s21  }
 0x384 PF: > { %p2525_p2 = scmp.ge.s32.totalorder %s2667_s23, 2  ;;  %s1780_s16 = sand.u32 1, %s2647_s18  }
 0x385   : > { %s1781_s9 = scalar_lea.sflag [#allocation3], %s1780_s16 }
 0x386   : > { %p2522_p3 = pnand %p2525_p2, %p2749_p8 }
 0x388   : > { %2642 = dma.done.wait (!%p2522_p3), %s1781_s9, 1536  }
 0x389   : > { %2644 = vsyncadd (!%p2522_p3), %s1781_s9, 4294965760  ;;  %s18_s23 = sadd.s32 1, %s2667_s23   ;;  %s4738_s18 = smov %s2651_s19 }
 0x38a   : > { %p15_p5 = scmp.ge.s32.totalorder %s18_s23, 4   ;;  %s4739_s19 = smov %s2655_s20 }
 0x38b   : > { %s4740_s20 = smov %s2755_s6  ;;  %s4741_s21 = smov %s2663_s22 }
 0x38c   : > { %s4742_s22 = smov %s4744_s26  ;;  %17 = sbr.rel (!%p15_p5) target bundleno = 4 (0x4), region = 78 }
 0x393   :  { %1786 = vsyncpa [#allocation3], 1 }
 0x394   :  { %1788 = vsyncpa [#allocation3 + $0x1], 1 }

</bundles_post_ra>
